<compile_context>
chip_gen: v7x
topology: tpu7x:2x2x1
jax: 0.10.0
libtpu: 0.0.40
codegen_flags: <defaults>
</compile_context>

<pallas_src>
import functools

import jax
import jax.numpy as jnp
from jax import lax
from jax.experimental import pallas as pl
from jax.experimental.pallas import tpu as pltpu

BN_EPS = 1e-5


def _round_up(x, m):
    return ((x + m - 1) // m) * m


def _cdiv(a, b):
    return -(-a // b)


def _conv_bn_kernel(x_ref, w_ref, b_ref, o_ref, *, tap_offsets, rows_tile):
    """One (batch, row-tile) grid step.

    x_ref : (1, R_all, Cin)           whole padded, flattened image (resident
                                      across the row-tile grid axis)
    w_ref : (kh*kw*Cin, Cout_pad)     BN-folded weights, K ordered (i, j, cin)
    b_ref : (1, Cout_pad)             BN-folded bias (f32)
    o_ref : (1, rows_tile, Cout_pad)  dense stride-1 conv output rows
    """
    r = pl.program_id(1)
    base = pl.multiple_of(r * rows_tile, 8)      # rows_tile is a multiple of 8
    taps = [x_ref[0, pl.ds(base + off, rows_tile), :] for off in tap_offsets]
    # Fold the kh*kw taps into the contraction dimension -> one big-K matmul.
    patch = taps[0] if len(taps) == 1 else jnp.concatenate(taps, axis=-1)
    acc = jnp.dot(patch, w_ref[...], preferred_element_type=jnp.float32)
    o_ref[0] = (acc + b_ref[...]).astype(o_ref.dtype)


def basic_conv2d(x, weight, bn_gamma, bn_beta, bn_mean, bn_var, *,
                 stride=1, padding=0, dilation=1, eps=BN_EPS,
                 compute_dtype=None, rows_tile=256):
    """Forward of BasicConv2d: BatchNorm2d(Conv2d(x, bias=False)).  No ReLU
    (the PyTorch module constructs ReLU but does not apply it in forward).

    x      : (B, Cin, H, W)        NCHW, like PyTorch
    weight : (Cout, Cin, kh, kw)   Conv2d weight
    bn_*   : (Cout,)               BatchNorm2d affine params / running stats
    Returns (B, Cout, Hout, Wout).
    """
    B, Cin, H, W = x.shape
    Cout, cin_w, kh, kw = weight.shape
    assert cin_w == Cin, "weight / input channel mismatch"
    s, p, d = stride, padding, dilation
    if compute_dtype is None:
        # On v6e / v7x, pass compute_dtype=jnp.bfloat16 for ~2-4x MXU
        # throughput and half the activation VMEM/DMA footprint (accumulation
        # stays f32; widen tolerances accordingly).  Default keeps x.dtype.
        compute_dtype = x.dtype

    Hp = H + 2 * p
    Wp = W + 2 * p
    Hf = Hp - d * (kh - 1)                    # stride-1 valid output extent
    Wf = Wp - d * (kw - 1)
    assert Hf >= 1 and Wf >= 1, "kernel larger than padded input"
    Hout = (Hf - 1) // s + 1
    Wout = (Wf - 1) // s + 1

    # Lane / sublane friendly sizes.
    Wp_a = _round_up(Wp, 8)                   # sublane-aligned row pitch
    Cout_pad = _round_up(Cout, 128)           # lane-dense output channels
    K = kh * kw * Cin

    # Rows of the dense stride-1 output we actually need, split into tiles.
    rows_need = Hf * Wp_a
    rt = min(_round_up(rows_tile, 8), _round_up(rows_need, 8))
    num_r = _cdiv(rows_need, rt)
    rt = _round_up(_cdiv(rows_need, num_r), 8)   # shrink tile to cut waste
    m_total = num_r * rt

    # Tap row shifts inside the flattened padded image (i-major, then j).
    tap_offsets = tuple(i * d * Wp_a + j * d
                        for i in range(kh) for j in range(kw))
    extra = tap_offsets[-1]                   # largest shift (over-read rows)
    r_in = m_total + extra
    H_rows = _cdiv(r_in, Wp_a)                # padded image rows to materialize
    R_all = H_rows * Wp_a

    # ---- fold inference-mode BatchNorm into conv weight / bias (in f32) ----
    scale = (bn_gamma / jnp.sqrt(bn_var + eps)).astype(jnp.float32)
    w_hwio = jnp.transpose(weight, (2, 3, 1, 0)).astype(jnp.float32) * scale
    w_mat = w_hwio.reshape(K, Cout)
    w_mat = jnp.pad(w_mat, ((0, 0), (0, Cout_pad - Cout))).astype(compute_dtype)
    b_vec = jnp.pad((bn_beta - bn_mean * scale).astype(jnp.float32),
                    (0, Cout_pad - Cout)).reshape(1, Cout_pad)

    # ---- layout: NCHW -> NHWC, one combined pad, flatten rows ----
    # TODO(synk): keeping activations NHWC across layers would drop these
    #             NCHW<->NHWC transposes entirely.
    xt = jnp.transpose(x, (0, 2, 3, 1))                       # (B, H, W, Cin)
    x_pad = jnp.pad(
        xt, ((0, 0), (p, H_rows - H - p), (p, Wp_a - W - p), (0, 0)))
    x_flat = x_pad.reshape(B, R_all, Cin).astype(compute_dtype)

    kern = functools.partial(_conv_bn_kernel,
                             tap_offsets=tap_offsets, rows_tile=rt)

    # VMEM budget: double-buffered blocks (+ headroom for the patch value).
    itm = jnp.dtype(compute_dtype).itemsize
    out_itm = jnp.dtype(x.dtype).itemsize
    vmem_needed = 2 * (R_all * _round_up(Cin, 128) * itm      # input block
                       + K * Cout_pad * itm                   # folded weights
                       + Cout_pad * 4                         # folded bias
                       + rt * Cout_pad * out_itm)             # output block
    vmem_needed += 2 * rt * _round_up(K, 128) * 4 + (4 << 20)  # patch headroom
    vmem_limit = int(min(max(vmem_needed, 16 << 20), 64 << 20))

    out_full = pl.pallas_call(
        kern,
        out_shape=jax.ShapeDtypeStruct((B, m_total, Cout_pad), x.dtype),
        grid_spec=pltpu.PrefetchScalarGridSpec(
            num_scalar_prefetch=0,
            grid=(B, num_r),
            in_specs=[
                # Whole padded image per batch element; block index constant
                # along the row-tile axis -> DMA'd once per batch element.
                pl.BlockSpec((1, R_all, Cin), lambda b, r: (b, 0, 0)),
                pl.BlockSpec((K, Cout_pad), lambda b, r: (0, 0)),
                pl.BlockSpec((1, Cout_pad), lambda b, r: (0, 0)),
            ],
            out_specs=pl.BlockSpec((1, rt, Cout_pad), lambda b, r: (b, r, 0)),
        ),
        compiler_params=pltpu.CompilerParams(
            dimension_semantics=("parallel", "parallel"),
            vmem_limit_bytes=vmem_limit),
    )(x_flat, w_mat, b_vec)

    # Crop the dense stride-1 grid back to the valid, strided output -> NCHW.
    out = out_full[:, :rows_need, :Cout].reshape(B, Hf, Wp_a, Cout)
    out = out[:, ::s, :Wf:s, :]
    return jnp.transpose(out, (0, 3, 1, 2))


def _reference(x, weight, gamma, beta, rmean, rvar, *, stride, padding,
               dilation, eps=BN_EPS):
    """Pure-JAX reference matching PyTorch forward (conv -> eval-mode BN)."""
    out = lax.conv_general_dilated(
        x, weight,
        window_strides=(stride, stride),
        padding=((padding, padding), (padding, padding)),
        rhs_dilation=(dilation, dilation),
        dimension_numbers=("NCHW", "OIHW", "NCHW"),
        precision=lax.Precision.HIGHEST)
    scale = (gamma / jnp.sqrt(rvar + eps))[None, :, None, None]
    shift = (beta - rmean * gamma / jnp.sqrt(rvar + eps))[None, :, None, None]
    return out * scale + shift


if __name__ == "__main__":
    key = jax.random.PRNGKey(0)
    k1, k2, k3, k4, k5, k6 = jax.random.split(key, 6)

    # BasicConv2d(in_planes=8, out_planes=16, kernel_size=3, stride=1,
    #             padding=1, dilation=1) on a (2, 8, 16, 16) input.
    B, Cin, H, W = 2, 8, 16, 16
    Cout, ksize, stride, pad, dil = 16, 3, 1, 1, 1

    x = jax.random.normal(k1, (B, Cin, H, W), dtype=jnp.float32)
    weight = 0.2 * jax.random.normal(k2, (Cout, Cin, ksize, ksize),
                                     dtype=jnp.float32)
    gamma = 1.0 + 0.1 * jax.random.normal(k3, (Cout,), dtype=jnp.float32)
    beta = 0.1 * jax.random.normal(k4, (Cout,), dtype=jnp.float32)
    rmean = 0.1 * jax.random.normal(k5, (Cout,), dtype=jnp.float32)
    rvar = 0.5 + jnp.abs(jax.random.normal(k6, (Cout,), dtype=jnp.float32))

    out = basic_conv2d(x, weight, gamma, beta, rmean, rvar,
                       stride=stride, padding=pad, dilation=dil)
    out = jax.block_until_ready(out)

    ref = _reference(x, weight, gamma, beta, rmean, rvar,
                     stride=stride, padding=pad, dilation=dil)

    Hout = (H + 2 * pad - dil * (ksize - 1) - 1) // stride + 1
    Wout = (W + 2 * pad - dil * (ksize - 1) - 1) // stride + 1
    assert out.shape == (B, Cout, Hout, Wout), out.shape
    err = float(jnp.max(jnp.abs(out - ref)))
    # Tolerance covers the MXU's default (bf16-pass based) f32 matmul
    # precision in the fused kernel vs the HIGHEST-precision XLA reference.
    assert err < 5e-2, err

    print("KERNEL_OK")
</pallas_src>

<mosaic_0001>
module attributes {stable_mosaic.version = 11 : i64} {
  func.func @_conv_bn_kernel(%arg0: i32, %arg1: i32, %arg2: memref<1x456x8xf32, #tpu.memory_space<vmem>>, %arg3: memref<72x128xf32, #tpu.memory_space<vmem>>, %arg4: memref<1x128xf32, #tpu.memory_space<vmem>>, %arg5: memref<1x192x128xf32, #tpu.memory_space<vmem>>) attributes {dimension_semantics = [#tpu.dimension_semantics<parallel>, #tpu.dimension_semantics<parallel>], iteration_bounds = array<i64: 2, 2>, scalar_prefetch = 0 : i64, scratch_operands = 0 : i64, tpu.core_type = #tpu.core_type<tc>, window_params = [{transform_indices = @transform_0, window_bounds = array<i64: 1, 456, 8>}, {pipeline_mode = #tpu.pipeline_mode<synchronous>, transform_indices = @transform_1, window_bounds = array<i64: 72, 128>}, {pipeline_mode = #tpu.pipeline_mode<synchronous>, transform_indices = @transform_2, window_bounds = array<i64: 1, 128>}, {transform_indices = @transform_3, window_bounds = array<i64: 1, 192, 128>}]} {
    %c192_i32 = arith.constant 192 : i32
    %0 = arith.muli %arg1, %c192_i32 : i32
    %1 = tpu.assume_multiple %0, 8 : i32
    %c0_i32 = arith.constant 0 : i32
    %2 = arith.addi %1, %c0_i32 : i32
    %c0 = arith.constant 0 : index
    %3 = arith.index_cast %2 : i32 to index
    %c0_0 = arith.constant 0 : index
    %4 = vector.load %arg2[%c0, %3, %c0_0] : memref<1x456x8xf32, #tpu.memory_space<vmem>>, vector<1x192x8xf32>
    %5 = vector.shape_cast %4 : vector<1x192x8xf32> to vector<192x8xf32>
    %c1_i32 = arith.constant 1 : i32
    %6 = arith.addi %1, %c1_i32 : i32
    %c0_1 = arith.constant 0 : index
    %7 = arith.index_cast %6 : i32 to index
    %c0_2 = arith.constant 0 : index
    %8 = vector.load %arg2[%c0_1, %7, %c0_2] : memref<1x456x8xf32, #tpu.memory_space<vmem>>, vector<1x192x8xf32>
    %9 = vector.shape_cast %8 : vector<1x192x8xf32> to vector<192x8xf32>
    %c2_i32 = arith.constant 2 : i32
    %10 = arith.addi %1, %c2_i32 : i32
    %c0_3 = arith.constant 0 : index
    %11 = arith.index_cast %10 : i32 to index
    %c0_4 = arith.constant 0 : index
    %12 = vector.load %arg2[%c0_3, %11, %c0_4] : memref<1x456x8xf32, #tpu.memory_space<vmem>>, vector<1x192x8xf32>
    %13 = vector.shape_cast %12 : vector<1x192x8xf32> to vector<192x8xf32>
    %c24_i32 = arith.constant 24 : i32
    %14 = arith.addi %1, %c24_i32 : i32
    %c0_5 = arith.constant 0 : index
    %15 = arith.index_cast %14 : i32 to index
    %c0_6 = arith.constant 0 : index
    %16 = vector.load %arg2[%c0_5, %15, %c0_6] : memref<1x456x8xf32, #tpu.memory_space<vmem>>, vector<1x192x8xf32>
    %17 = vector.shape_cast %16 : vector<1x192x8xf32> to vector<192x8xf32>
    %c25_i32 = arith.constant 25 : i32
    %18 = arith.addi %1, %c25_i32 : i32
    %c0_7 = arith.constant 0 : index
    %19 = arith.index_cast %18 : i32 to index
    %c0_8 = arith.constant 0 : index
    %20 = vector.load %arg2[%c0_7, %19, %c0_8] : memref<1x456x8xf32, #tpu.memory_space<vmem>>, vector<1x192x8xf32>
    %21 = vector.shape_cast %20 : vector<1x192x8xf32> to vector<192x8xf32>
    %c26_i32 = arith.constant 26 : i32
    %22 = arith.addi %1, %c26_i32 : i32
    %c0_9 = arith.constant 0 : index
    %23 = arith.index_cast %22 : i32 to index
    %c0_10 = arith.constant 0 : index
    %24 = vector.load %arg2[%c0_9, %23, %c0_10] : memref<1x456x8xf32, #tpu.memory_space<vmem>>, vector<1x192x8xf32>
    %25 = vector.shape_cast %24 : vector<1x192x8xf32> to vector<192x8xf32>
    %c48_i32 = arith.constant 48 : i32
    %26 = arith.addi %1, %c48_i32 : i32
    %c0_11 = arith.constant 0 : index
    %27 = arith.index_cast %26 : i32 to index
    %c0_12 = arith.constant 0 : index
    %28 = vector.load %arg2[%c0_11, %27, %c0_12] : memref<1x456x8xf32, #tpu.memory_space<vmem>>, vector<1x192x8xf32>
    %29 = vector.shape_cast %28 : vector<1x192x8xf32> to vector<192x8xf32>
    %c49_i32 = arith.constant 49 : i32
    %30 = arith.addi %1, %c49_i32 : i32
    %c0_13 = arith.constant 0 : index
    %31 = arith.index_cast %30 : i32 to index
    %c0_14 = arith.constant 0 : index
    %32 = vector.load %arg2[%c0_13, %31, %c0_14] : memref<1x456x8xf32, #tpu.memory_space<vmem>>, vector<1x192x8xf32>
    %33 = vector.shape_cast %32 : vector<1x192x8xf32> to vector<192x8xf32>
    %c50_i32 = arith.constant 50 : i32
    %34 = arith.addi %1, %c50_i32 : i32
    %c0_15 = arith.constant 0 : index
    %35 = arith.index_cast %34 : i32 to index
    %c0_16 = arith.constant 0 : index
    %36 = vector.load %arg2[%c0_15, %35, %c0_16] : memref<1x456x8xf32, #tpu.memory_space<vmem>>, vector<1x192x8xf32>
    %37 = vector.shape_cast %36 : vector<1x192x8xf32> to vector<192x8xf32>
    %38 = tpu.concatenate %5, %9, %13, %17, %21, %25, %29, %33, %37 in 1 : vector<192x8xf32>, vector<192x8xf32>, vector<192x8xf32>, vector<192x8xf32>, vector<192x8xf32>, vector<192x8xf32>, vector<192x8xf32>, vector<192x8xf32>, vector<192x8xf32> -> vector<192x72xf32>
    %c0_17 = arith.constant 0 : index
    %c0_18 = arith.constant 0 : index
    %39 = vector.load %arg3[%c0_17, %c0_18] : memref<72x128xf32, #tpu.memory_space<vmem>>, vector<72x128xf32>
    %cst = arith.constant dense<0.000000e+00> : vector<192x128xf32>
    %40 = tpu.matmul %38, %39, %cst {dimension_numbers = #tpu.dot_dimension_numbers<[1], [0], [0], [1], [0, 0, 1, 1], [], []>} : vector<192x72xf32>, vector<72x128xf32>, vector<192x128xf32> -> vector<192x128xf32>
    %c0_19 = arith.constant 0 : index
    %c0_20 = arith.constant 0 : index
    %41 = vector.load %arg4[%c0_19, %c0_20] : memref<1x128xf32, #tpu.memory_space<vmem>>, vector<1x128xf32>
    %42 = vector.broadcast %41 : vector<1x128xf32> to vector<192x128xf32>
    %43 = arith.addf %40, %42 : vector<192x128xf32>
    %c0_21 = arith.constant 0 : index
    %c0_22 = arith.constant 0 : index
    %c0_23 = arith.constant 0 : index
    %44 = vector.load %arg5[%c0_21, %c0_22, %c0_23] : memref<1x192x128xf32, #tpu.memory_space<vmem>>, vector<1x192x128xf32>
    %45 = vector.shape_cast %44 : vector<1x192x128xf32> to vector<192x128xf32>
    %46 = vector.shape_cast %43 : vector<192x128xf32> to vector<1x192x128xf32>
    tpu.vector_store %arg5[%c0_21, %c0_22, %c0_23], %46 {strides = array<i32>} : memref<1x192x128xf32, #tpu.memory_space<vmem>>, vector<1x192x128xf32>,
    return
  }
  func.func @transform_0(%arg0: i32, %arg1: i32) -> (i32, i32, i32) {
    %c0_i32 = arith.constant 0 : i32
    %c0_i32_0 = arith.constant 0 : i32
    %c0_i32_1 = arith.constant 0 : i32
    return %arg0, %c0_i32, %c0_i32_0 : i32, i32, i32
  }
  func.func @transform_1(%arg0: i32, %arg1: i32) -> (i32, i32) {
    %c0_i32 = arith.constant 0 : i32
    %c0_i32_0 = arith.constant 0 : i32
    %c0_i32_1 = arith.constant 0 : i32
    return %c0_i32, %c0_i32_0 : i32, i32
  }
  func.func @transform_2(%arg0: i32, %arg1: i32) -> (i32, i32) {
    %c0_i32 = arith.constant 0 : i32
    %c0_i32_0 = arith.constant 0 : i32
    %c0_i32_1 = arith.constant 0 : i32
    return %c0_i32, %c0_i32_0 : i32, i32
  }
  func.func @transform_3(%arg0: i32, %arg1: i32) -> (i32, i32, i32) {
    %c0_i32 = arith.constant 0 : i32
    %c0_i32_0 = arith.constant 0 : i32
    return %arg0, %arg1, %c0_i32 : i32, i32, i32
  }
}

</mosaic_0001>

<bundles_post_ra>
// kernel: tpu_custom_call.1
= control target key start
LH: loop header
LB: loop body
LE: loop exit
PB: predicated region body
PF: predicated region fallthrough
CT: control target
= control target key end

     0   :  { %8 = vsyncpa [#allocation3], 0  ;;  %s3665_s0 = inlined_call_operand.vmem [shape: f32[2,456,8], index: 0, kind: input, shape index: {}]   ;;  %s3666_s1 = inlined_call_operand.vmem [shape: f32[72,128], index: 1, kind: input, shape index: {}]   ;;  %s3667_s2 = inlined_call_operand.vmem [shape: f32[1,128], index: 2, kind: input, shape index: {}]   ;;  %s3668_s3 = inlined_call_operand.hbm [shape: f32[2,384,128], index: 3, kind: output, shape index: {}]  }
   0x1   :  { %10 = vsyncpa [#allocation3 + $0x1], 0  ;;  %s2350_s12 = smov 0   ;;  %s2352_s13 = smov 0  }
   0x2   :  { %s2354_s14 = smov 0   ;;  %s2356_s15 = smov 0  }
   0x3   :  { %s2358_s16 = smov 0   ;;  %s2360_s17 = smov 0  }
   0x4   :  { %s2362_s18 = smov 0   ;;  %s2364_s19 = smov 0  }
   0x5 LB: > { %s1802_s20 = sadd.s32 4294967295, %s2318_s19   ;;  %s1803_s21 = sadd.s32 4294967294, %s2318_s19   ;;  %s2318_s19 = sphi %s2364_s19, %s16_s19   ;;  %s2314_s18 = sphi %s2362_s18, %s3740_s18   ;;  %s2310_s17 = sphi %s2360_s17, %s3739_s17   ;;  %s2306_s16 = sphi %s2358_s16, %s3738_s16   ;;  %s2302_s15 = sphi %s2356_s15, %s3737_s15   ;;  %s2298_s14 = sphi %s2354_s14, %s3736_s14   ;;  %s2294_s13 = sphi %s2352_s13, %s3735_s13   ;;  %s2290_s12 = sphi %s2350_s12, %s3734_s12  }
   0x6   : > { %s25_s22 = sadd.s32 1, %s2310_s17  ;;  %s28_s23 = sadd.s32 1, %s2314_s18 }
   0x7   : > { %p26_p0 = scmp.ge.s32.totalorder %s25_s22, 2  ;;  %p115_p1 = scmp.ne.s32.totalorder %s2298_s14, %s2294_s13 }
   0x8   : > { %p116_p2 = scmp.eq.s32.totalorder %s1802_s20, 3  ;;  %p121_p5 = scmp.ne.s32.totalorder %s2294_s13, %s2290_s12 }
   0x9   : > { %s3742_s22 = smov (%p26_p0, %s25_s22), 0  ;;  %s3744_s23 = smov (!%p26_p0, %s28_s23), %s2314_s18 }
   0xa   : > { %s101_s24 = ssub.s32 %s2310_s17, %s3742_s22  ;;  %p2401_p3 = por %p116_p2, %p115_p1 }
   0xb   : > { %p30_p4 = scmp.ge.s32.totalorder %s3744_s23, 2  ;;  %p122_p6 = scmp.eq.s32.totalorder %s1803_s21, 3 }
   0xc   : > { %p1806_p7 = scmp.ge.s32.totalorder %s2318_s19, 1  ;;  %p154_p9 = scmp.lt.s32.totalorder %s2318_s19, 5 }
   0xd   : > { %s3746_s23 = smov (%p30_p4, %s3744_s23), 0  ;;  %p2410_p8 = por %p122_p6, %p121_p5 }
   0xe   : > { %s100_s27 = ssub.s32 %s2314_s18, %s3746_s23  ;;  %s105_s28 = sadd.s32 1, %s2298_s14 }
   0xf   : > { %s102_s29 = sor.u32 %s101_s24, %s100_s27  ;;  %p155_p10 = pnand %p1806_p7, %p154_p9 }
  0x10   : > { %p103_p11 = scmp.eq.s32.totalorder %s102_s29, 0 }
  0x11   : > { %158 = sbr.rel (%p155_p10) target bundleno = 759 (0x2f7), region = 32 }
  0x12   : > { %s2419_s30 = scalar_select %p103_p11, %s2298_s14, %s105_s28  }
  0x18   : > { %p178_p12 = scmp.lt.s32.totalorder %s2306_s16, 1  ;;  %s184_s5 = smul.u32 192, %s2302_s15  ;;  %v1386_v54 = vld [vmem:[%s3666_s1] sm:$0xff]  ;;  %v1387_v55 = vld [vmem:[%s3666_s1 + $0x8] sm:$0xff]  ;;  %v1388_v59 = vld [vmem:[%s3666_s1 + $0x10] sm:$0xff]  ;;  %vm1186_vm0 = vcmask 64512  }
  0x19   : > { %s2320_s11 = smov 8   ;;  %s2321_s20 = smov 16   ;;  %v2115_v56 = vpack.c.bf16 %v1387_v55, %v1386_v54  ;;  %v1389_v60 = vld [vmem:[%s3666_s1 + $0x18] sm:$0xff]  ;;  %vm1211_vm1 = vcmask 130048   ;;  %vm1236_vm2 = vcmask 195584   ;;  %vm1261_vm3 = vcmask 261120  }
  0x1a   : > { %s179_s4 = scalar_select %p178_p12, %s2306_s16, 1  ;;  %v2119_v61 = vpack.c.bf16 %v1389_v60, %v1388_v59  ;;  %vm1286_vm4 = vcmask 326656   ;;  %vm1311_vm5 = vcmask 392192   ;;  %vm1336_vm6 = vcmask 457728  }
  0x1b   : > { %s2322_s21 = smov 24   ;;  %s2323_s24 = smov 32   ;;  %2116 = vmatprep.subr.bf16.mxu0 %v2115_v56  ;;  %2131 = vmatprep.subr.bf16.mxu1 %v2115_v56  ;;  %vm1361_vm7 = vcmask 523264   ;;  %vm1402_vm8 = vcmask 588800  }
  0x1c   : > { %s2142_s6 = smul.u32 456, %s179_s4  ;;  %s2324_s27 = smov 40   ;;  %2118 = vmatpush3.bf16.msra.mxu0 %v2115_v56  ;;  %2136 = vmatpush3.bf16.msra.mxu1 %v2115_v56 }
  0x1d   : > { %s2325_s28 = smov 48   ;;  %s2326_s4 = smov 56   ;;  %2120 = vmatprep.subr.bf16.mxu0 %v2119_v61  ;;  %2132 = vmatprep.subr.bf16.mxu1 %v2119_v61 }
  0x1e   : > { %s182_s9 = scalar_lea.vmem %s3665_s0, %s2142_s6 }
  0x1f   : > { %s2427_s10 = scalar_lea.vmem %s182_s9, %s184_s5  ;;  %s2327_s9 = smov 64  }
  0x20   : > { %v1810_v0 = vld [vmem:[%s2427_s10 + $0x11] sm:$0xff]  ;;  %v1808_v1 = vld [vmem:[%s2427_s10 + $0x1] sm:$0xff]  ;;  %v2434_v2 = vld [vmem:[%s2427_s10 + $0x19] sm:$0xff]  ;;  %2122 = vmatpush3.bf16.msra.mxu0 %v2119_v61  ;;  %2137 = vmatpush3.bf16.msra.mxu1 %v2119_v61 }
  0x21   : > { %446 = vrot.lane.b32.xlu1 %v1810_v0, %s2320_s11  ;;  %442 = vrot.lane.b32.xlu0 %v1808_v1, %s2320_s11  ;;  %v1809_v3 = vld [vmem:[%s2427_s10 + $0x9] sm:$0xff]  ;;  %v2444_v5 = vld [vmem:[%s2427_s10 + $0x21] sm:$0xff] }
  0x22   : > { %v2441_v4 = vld [vmem:[%s2427_s10 + $0x29] sm:$0xff]  ;;  %v2451_v6 = vld [vmem:[%s2427_s10 + $0x39] sm:$0xff]  ;;  %v2454_v7 = vld [vmem:[%s2427_s10 + $0x31] sm:$0xff] }
  0x23   : > { %v2461_v8 = vld [vmem:[%s2427_s10 + $0x49] sm:$0xff]  ;;  %v2464_v9 = vld [vmem:[%s2427_s10 + $0x41] sm:$0xff]  ;;  %v2471_v10 = vld [vmem:[%s2427_s10 + $0x59] sm:$0xff] }
  0x24   : > { %v2474_v11 = vld [vmem:[%s2427_s10 + $0x51] sm:$0xff]  ;;  %v2481_v12 = vld [vmem:[%s2427_s10 + $0x69] sm:$0xff]  ;;  %v2484_v13 = vld [vmem:[%s2427_s10 + $0x61] sm:$0xff] }
  0x25   : > { %448 = vrot.lane.b32.xlu1 %v2434_v2, %s2320_s11  ;;  %444 = vrot.lane.b32.xlu0 %v1809_v3, %s2320_s11  ;;  %v2491_v14 = vld [vmem:[%s2427_s10 + $0x79] sm:$0xff]  ;;  %v1822_v15 = vld [vmem:[%s2427_s10 + $0x71] sm:$0xff] }
  0x26   : > { %v2498_v16 = vld [vmem:[%s2427_s10 + $0x89] sm:$0xff]  ;;  %v2501_v17 = vld [vmem:[%s2427_s10 + $0x81] sm:$0xff]  ;;  %v2508_v18 = vld [vmem:[%s2427_s10 + $0x99] sm:$0xff] }
  0x27   : > { %v2511_v19 = vld [vmem:[%s2427_s10 + $0x91] sm:$0xff]  ;;  %v2518_v20 = vld [vmem:[%s2427_s10 + $0xa9] sm:$0xff]  ;;  %v2521_v21 = vld [vmem:[%s2427_s10 + $0xa1] sm:$0xff] }
  0x28   : > { %v2528_v22 = vld [vmem:[%s2427_s10 + $0xb9] sm:$0xff]  ;;  %v2531_v23 = vld [vmem:[%s2427_s10 + $0xb1] sm:$0xff]  ;;  %v1832_v25 = vld [vmem:[%s2427_s10 + $0x2] sm:$0xff] }
  0x29   : > { %452 = vrot.lane.b32.xlu1 %v2441_v4, %s2320_s11  ;;  %450 = vrot.lane.b32.xlu0 %v2444_v5, %s2320_s11  ;;  %v1833_v24 = vld [vmem:[%s2427_s10 + $0xa] sm:$0xff]  ;;  %v1835_v26 = vld [vmem:[%s2427_s10 + $0x1a] sm:$0xff] }
  0x2a   : > { %v1834_v27 = vld [vmem:[%s2427_s10 + $0x12] sm:$0xff]  ;;  %v2546_v28 = vld [vmem:[%s2427_s10 + $0x2a] sm:$0xff]  ;;  %v1836_v29 = vld [vmem:[%s2427_s10 + $0x22] sm:$0xff] }
  0x2b   : > { %v2553_v30 = vld [vmem:[%s2427_s10 + $0x3a] sm:$0xff]  ;;  %v2556_v31 = vld [vmem:[%s2427_s10 + $0x32] sm:$0xff]  ;;  %v2563_v32 = vld [vmem:[%s2427_s10 + $0x4a] sm:$0xff] }
  0x2c   : > { %v2566_v33 = vld [vmem:[%s2427_s10 + $0x42] sm:$0xff]  ;;  %v2573_v34 = vld [vmem:[%s2427_s10 + $0x5a] sm:$0xff]  ;;  %v2576_v35 = vld [vmem:[%s2427_s10 + $0x52] sm:$0xff] }
  0x2d   : > { %456 = vrot.lane.b32.xlu1 %v2451_v6, %s2320_s11  ;;  %454 = vrot.lane.b32.xlu0 %v2454_v7, %s2320_s11  ;;  %v2583_v36 = vld [vmem:[%s2427_s10 + $0x6a] sm:$0xff]  ;;  %v2586_v37 = vld [vmem:[%s2427_s10 + $0x62] sm:$0xff] }
  0x2e   : > { %v1847_v38 = vld [vmem:[%s2427_s10 + $0x7a] sm:$0xff]  ;;  %v1846_v39 = vld [vmem:[%s2427_s10 + $0x72] sm:$0xff]  ;;  %v2597_v40 = vld [vmem:[%s2427_s10 + $0x8a] sm:$0xff] }
  0x2f   : > { %v1848_v41 = vld [vmem:[%s2427_s10 + $0x82] sm:$0xff]  ;;  %v2604_v42 = vld [vmem:[%s2427_s10 + $0x78] sm:$0xff]  ;;  %v2633_v46 = vld [vmem:[%s2427_s10 + $0x90] sm:$0xff] }
  0x30   : > { %v2607_v43 = vld [vmem:[%s2427_s10 + $0x18] sm:$0xff]  ;;  %v2614_v44 = vld [vmem:[%s2427_s10 + $0x80] sm:$0xff]  ;;  %v1928_v47 = vld [vmem:[%s2427_s10 + $0x30] sm:$0xff] }
  0x31   : > { %460 = vrot.lane.b32.xlu1 %v2461_v8, %s2320_s11  ;;  %458 = vrot.lane.b32.xlu0 %v2464_v9, %s2320_s11  ;;  %v1857_v45 = vld [vmem:[%s2427_s10 + $0x20] sm:$0xff]  ;;  %v2640_v48 = vld [vmem:[%s2427_s10 + $0x88] sm:$0xff] }
  0x32   : > { %v1858_v49 = vld [vmem:[%s2427_s10 + $0x28] sm:$0xff]  ;;  %v2647_v50 = vld [vmem:[%s2427_s10 + $0x98] sm:$0xff] }
  0x33   : > { %v2650_v51 = vld [vmem:[%s2427_s10 + $0x38] sm:$0xff]  ;;  %v1391_v3 = vld [vmem:[%s3666_s1 + $0x28] sm:$0xff] }
  0x34   : > { %v2756_v59 = vld [vmem:[%s2427_s10 + $0x9a] sm:$0xff] }
  0x35   : > { %464 = vrot.lane.b32.xlu1 %v2471_v10, %s2320_s11  ;;  %462 = vrot.lane.b32.xlu0 %v2474_v11, %s2320_s11 }
  0x39   : > { %468 = vrot.lane.b32.xlu1 %v2481_v12, %s2320_s11  ;;  %466 = vrot.lane.b32.xlu0 %v2484_v13, %s2320_s11 }
  0x3d   : > { %472 = vrot.lane.b32.xlu1 %v2491_v14, %s2320_s11  ;;  %470 = vrot.lane.b32.xlu0 %v1822_v15, %s2320_s11 }
  0x41   : > { %476 = vrot.lane.b32.xlu1 %v2498_v16, %s2320_s11  ;;  %474 = vrot.lane.b32.xlu0 %v2501_v17, %s2320_s11 }
  0x45   : > { %480 = vrot.lane.b32.xlu1 %v2508_v18, %s2320_s11  ;;  %478 = vrot.lane.b32.xlu0 %v2511_v19, %s2320_s11 }
  0x49   : > { %484 = vrot.lane.b32.xlu1 %v2518_v20, %s2320_s11  ;;  %482 = vrot.lane.b32.xlu0 %v2521_v21, %s2320_s11 }
  0x4d   : > { %488 = vrot.lane.b32.xlu1 %v2528_v22, %s2320_s11  ;;  %486 = vrot.lane.b32.xlu0 %v2531_v23, %s2320_s11 }
  0x51   : > { %540 = vrot.lane.b32.xlu1 %v1833_v24, %s2321_s20  ;;  %538 = vrot.lane.b32.xlu0 %v1832_v25, %s2321_s20  ;;  %v2703_v25 = vld [vmem:[%s2427_s10 + $0x40] sm:$0xff] }
  0x55   : > { %544 = vrot.lane.b32.xlu1 %v1835_v26, %s2321_s20  ;;  %542 = vrot.lane.b32.xlu0 %v1834_v27, %s2321_s20  ;;  %v1393_v27 = vld [vmem:[%s3666_s1 + $0x38] sm:$0xff] }
  0x59   : > { %548 = vrot.lane.b32.xlu1 %v2546_v28, %s2321_s20  ;;  %546 = vrot.lane.b32.xlu0 %v1836_v29, %s2321_s20 }
  0x5d   : > { %552 = vrot.lane.b32.xlu1 %v2553_v30, %s2321_s20  ;;  %550 = vrot.lane.b32.xlu0 %v2556_v31, %s2321_s20 }
  0x61   : > { %556 = vrot.lane.b32.xlu1 %v2563_v32, %s2321_s20  ;;  %554 = vrot.lane.b32.xlu0 %v2566_v33, %s2321_s20 }
  0x65   : > { %560 = vrot.lane.b32.xlu1 %v2573_v34, %s2321_s20  ;;  %558 = vrot.lane.b32.xlu0 %v2576_v35, %s2321_s20 }
  0x69   : > { %564 = vrot.lane.b32.xlu1 %v2583_v36, %s2321_s20  ;;  %562 = vrot.lane.b32.xlu0 %v2586_v37, %s2321_s20 }
  0x6d   : > { %568 = vrot.lane.b32.xlu1 %v1847_v38, %s2321_s20  ;;  %566 = vrot.lane.b32.xlu0 %v1846_v39, %s2321_s20 }
  0x71   : > { %572 = vrot.lane.b32.xlu1 %v2597_v40, %s2321_s20  ;;  %570 = vrot.lane.b32.xlu0 %v1848_v41, %s2321_s20 }
  0x75   : > { %658 = vrot.lane.b32.xlu1 %v2604_v42, %s2322_s21  ;;  %634 = vrot.lane.b32.xlu0 %v2607_v43, %s2322_s21 }
  0x79   : > { %660 = vrot.lane.b32.xlu1 %v2614_v44, %s2322_s21  ;;  %636 = vrot.lane.b32.xlu0 %v1857_v45, %s2322_s21 }
  0x7d   : > { %754 = vrot.lane.b32.xlu1 %v2491_v14, %s2323_s24  ;;  %730 = vrot.lane.b32.xlu0 %v2434_v2, %s2323_s24  ;;  %v1390_v2 = vld [vmem:[%s3666_s1 + $0x20] sm:$0xff] }
  0x81   : > { %756 = vrot.lane.b32.xlu1 %v2501_v17, %s2323_s24  ;;  %732 = vrot.lane.b32.xlu0 %v2444_v5, %s2323_s24  ;;  %v2123_v5 = vpack.c.bf16 %v1391_v3, %v1390_v2 }
  0x83   : > { %2124 = vmatprep.subr.bf16.mxu0 %v2123_v5  ;;  %2133 = vmatprep.subr.bf16.mxu1 %v2123_v5 }
  0x84   : > { %2126 = vmatpush3.bf16.msra.mxu0 %v2123_v5  ;;  %2138 = vmatpush3.bf16.msra.mxu1 %v2123_v5 }
  0x85   : > { %850 = vrot.lane.b32.xlu1 %v1847_v38, %s2324_s27  ;;  %826 = vrot.lane.b32.xlu0 %v1835_v26, %s2324_s27  ;;  %v1392_v26 = vld [vmem:[%s3666_s1 + $0x30] sm:$0xff] }
  0x89   : > { %852 = vrot.lane.b32.xlu1 %v1848_v41, %s2324_s27  ;;  %828 = vrot.lane.b32.xlu0 %v1836_v29, %s2324_s27  ;;  %v2127_v29 = vpack.c.bf16 %v1393_v27, %v1392_v26  ;;  %v2729_v41 = vld [vmem:[%s2427_s10 + $0x92] sm:$0xff]  ;;  %v2809_v27 = vld [vmem:[%s2427_s10 + $0x48] sm:$0xff] }
  0x8a   : > { %3690 = vst [vmem:[#allocation21_spill] sm:$0xff] %v2809_v27 }
  0x8b   : > { %2128 = vmatprep.subr.bf16.mxu0 %v2127_v29  ;;  %2134 = vmatprep.subr.bf16.mxu1 %v2127_v29 }
  0x8c   : > { %2130 = vmatpush3.bf16.msra.mxu0 %v2127_v29  ;;  %2139 = vmatpush3.bf16.msra.mxu1 %v2127_v29 }
  0x8d   : > { %946 = vrot.lane.b32.xlu1 %v2633_v46, %s2325_s28  ;;  %922 = vrot.lane.b32.xlu0 %v1928_v47, %s2325_s28 }
  0x91   : > { %662 = vrot.lane.b32.xlu1 %v2640_v48, %s2322_s21  ;;  %638 = vrot.lane.b32.xlu0 %v1858_v49, %s2322_s21 }
  0x93   : > { %v2652_v52 = vpop.permute.xlu1 %446  ;;  %v2654_v53 = vpop.permute.xlu0 %442 }
  0x95   : > { %948 = vrot.lane.b32.xlu1 %v2647_v50, %s2325_s28  ;;  %924 = vrot.lane.b32.xlu0 %v2650_v51, %s2325_s28 }
  0x97   : > { %v2666_v57 = vpop.permute.xlu1 %448  ;;  %v2668_v58 = vpop.permute.xlu0 %444 }
  0x99   : > { %1042 = vrot.lane.b32.xlu1 %v2511_v19, %s2326_s4  ;;  %1018 = vrot.lane.b32.xlu0 %v2454_v7, %s2326_s4 }
  0x9b   : > { %v453_v62 = vpop.permute.xlu1 %452  ;;  %v451_v63 = vpop.permute.xlu0 %450 }
  0x9c   : > { %v2681_v0 = vsel %vm1186_vm0, %v1858_v49, %v453_v62  ;;  %v2684_v1 = vsel %vm1186_vm0, %v1857_v45, %v451_v63  ;;  %v206_v63 = vld [vmem:[%s2427_s10 + $0xa0] sm:$0xff] }
  0x9d   : > { %3674 = vst [vmem:[#allocation5_spill] sm:$0xff] %v2681_v0  ;;  %3675 = vst [vmem:[#allocation6_spill] sm:$0xff] %v2684_v1  ;;  %664 = vrot.lane.b32.xlu1 %v2633_v46, %s2322_s21  ;;  %640 = vrot.lane.b32.xlu0 %v1928_v47, %s2322_s21  ;;  %v186_v1 = vld [vmem:[%s2427_s10] sm:$0xff] }
  0x9f   : > { %v457_v14 = vpop.permute.xlu1 %456  ;;  %v455_v15 = vpop.permute.xlu0 %454 }
  0xa0   : > { %v2697_v17 = vsel %vm1186_vm0, %v2650_v51, %v457_v14  ;;  %v2700_v24 = vsel %vm1186_vm0, %v1928_v47, %v455_v15 }
  0xa1   : > { %3676 = vst [vmem:[#allocation7_spill] sm:$0xff] %v2697_v17  ;;  %3677 = vst [vmem:[#allocation8_spill] sm:$0xff] %v2700_v24  ;;  %758 = vrot.lane.b32.xlu1 %v2498_v16, %s2323_s24  ;;  %734 = vrot.lane.b32.xlu0 %v2441_v4, %s2323_s24  ;;  %v1394_v4 = vld [vmem:[%s3666_s1 + $0x40] sm:$0xff]  ;;  %v1187_v24 = vsel %vm1186_vm0, %v186_v1, %v2654_v53 }
  0xa2   : > { %2077 = vmatprep.subr.mxu0 %v1394_v4  ;;  %2135 = vmatprep.subr.mxu1 %v1394_v4 }
  0xa3   : > { %v2715_v38 = vpop.permute.xlu1 %460  ;;  %v459_v39 = vpop.permute.xlu0 %458  ;;  %2078 = vmatpush3.msra.mxu0 %v1394_v4  ;;  %2140 = vmatpush3.msra.mxu1 %v1394_v4 }
  0xa4   : > { %3678 = vst [vmem:[#allocation9_spill] sm:$0xff] %v2715_v38  ;;  %v2719_v16 = vsel %vm1186_vm0, %v2703_v25, %v459_v39 }
  0xa5   : > { %3679 = vst [vmem:[#allocation10_spill] sm:$0xff] %v2719_v16  ;;  %1044 = vrot.lane.b32.xlu1 %v2508_v18, %s2326_s4  ;;  %1020 = vrot.lane.b32.xlu0 %v2451_v6, %s2326_s4 }
  0xa7   : > { %v2731_v45 = vpop.permute.xlu1 %464  ;;  %v2733_v47 = vpop.permute.xlu0 %462 }
  0xa8   : > { %3680 = vst [vmem:[#allocation11_spill] sm:$0xff] %v2731_v45  ;;  %3681 = vst [vmem:[#allocation12_spill] sm:$0xff] %v2733_v47  ;;  %v2897_v47 = vld [vmem:[%s2427_s10 + $0x50] sm:$0xff] }
  0xa9   : > { %1138 = vrot.lane.b32.xlu1 %v2729_v41, %s2327_s9  ;;  %1114 = vrot.lane.b32.xlu0 %v2556_v31, %s2327_s9  ;;  %3701 = vst [vmem:[#allocation32_spill] sm:$0xff] %v2897_v47 }
  0xab   : > { %v2739_v49 = vpop.permute.xlu1 %468  ;;  %v2741_v54 = vpop.permute.xlu0 %466 }
  0xad   : > { %760 = vrot.lane.b32.xlu1 %v2511_v19, %s2323_s24  ;;  %736 = vrot.lane.b32.xlu0 %v2454_v7, %s2323_s24 }
  0xaf   : > { %v2747_v55 = vpop.permute.xlu1 %472  ;;  %v2749_v56 = vpop.permute.xlu0 %470 }
  0xb1   : > { %854 = vrot.lane.b32.xlu1 %v2597_v40, %s2324_s27  ;;  %830 = vrot.lane.b32.xlu0 %v2546_v28, %s2324_s27 }
  0xb3   : > { %v477_v60 = vpop.permute.xlu1 %476  ;;  %v475_v61 = vpop.permute.xlu0 %474 }
  0xb4   : > { %v2760_v19 = vsel %vm1186_vm0, %v2640_v48, %v477_v60  ;;  %v2764_v7 = vsel %vm1186_vm0, %v2614_v44, %v475_v61  ;;  %v2783_v44 = vld [vmem:[%s2427_s10 + $0xa8] sm:$0xff] }
  0xb5   : > { %3682 = vst [vmem:[#allocation13_spill] sm:$0xff] %v2760_v19  ;;  %3683 = vst [vmem:[#allocation14_spill] sm:$0xff] %v2764_v7  ;;  %1140 = vrot.lane.b32.xlu1 %v2756_v59, %s2327_s9  ;;  %1116 = vrot.lane.b32.xlu0 %v2553_v30, %s2327_s9 }
  0xb7   : > { %v481_v40 = vpop.permute.xlu1 %480  ;;  %v479_v28 = vpop.permute.xlu0 %478 }
  0xb8   : > { %v2772_v62 = vsel %vm1186_vm0, %v2647_v50, %v481_v40  ;;  %v2776_v48 = vsel %vm1186_vm0, %v2633_v46, %v479_v28 }
  0xb9   : > { %3684 = vst [vmem:[#allocation15_spill] sm:$0xff] %v2772_v62  ;;  %3685 = vst [vmem:[#allocation16_spill] sm:$0xff] %v2776_v48  ;;  %856 = vrot.lane.b32.xlu1 %v2729_v41, %s2324_s27  ;;  %832 = vrot.lane.b32.xlu0 %v2556_v31, %s2324_s27  ;;  %v2993_v62 = vld [vmem:[%s2427_s10 + $0xba] sm:$0xff] }
  0xbb   : > { %v485_v2 = vpop.permute.xlu1 %484  ;;  %v483_v3 = vpop.permute.xlu0 %482 }
  0xbc   : > { %v2788_v5 = vsel %vm1186_vm0, %v2783_v44, %v485_v2  ;;  %v2791_v14 = vsel %vm1186_vm0, %v206_v63, %v483_v3 }
  0xbd   : > { %3686 = vst [vmem:[#allocation17_spill] sm:$0xff] %v2788_v5  ;;  %3687 = vst [vmem:[#allocation18_spill] sm:$0xff] %v2791_v14  ;;  %950 = vrot.lane.b32.xlu1 %v206_v63, %s2325_s28  ;;  %926 = vrot.lane.b32.xlu0 %v2703_v25, %s2325_s28  ;;  %v2919_v5 = vld [vmem:[%s2427_s10 + $0x58] sm:$0xff] }
  0xbe   : > { %v2922_v14 = vld [vmem:[%s2427_s10 + $0xb8] sm:$0xff] }
  0xbf   : > { %v2796_v46 = vpop.permute.xlu1 %488  ;;  %v2798_v31 = vpop.permute.xlu0 %486 }
  0xc0   : > { %3688 = vst [vmem:[#allocation19_spill] sm:$0xff] %v2796_v46  ;;  %3689 = vst [vmem:[#allocation20_spill] sm:$0xff] %v2798_v31 }
  0xc1   : > { %666 = vrot.lane.b32.xlu1 %v2647_v50, %s2322_s21  ;;  %642 = vrot.lane.b32.xlu0 %v2650_v51, %s2322_s21 }
  0xc3   : > { %v2804_v15 = vpop.permute.xlu1 %540  ;;  %v2806_v26 = vpop.permute.xlu0 %538 }
  0xc5   : > { %952 = vrot.lane.b32.xlu1 %v2783_v44, %s2325_s28  ;;  %928 = vrot.lane.b32.xlu0 %v2809_v27, %s2325_s28 }
  0xc7   : > { %v2815_v29 = vpop.permute.xlu1 %544  ;;  %v2817_v39 = vpop.permute.xlu0 %542 }
  0xc9   : > { %1046 = vrot.lane.b32.xlu1 %v2521_v21, %s2326_s4  ;;  %1022 = vrot.lane.b32.xlu0 %v2464_v9, %s2326_s4 }
  0xcb   : > { %v2823_v50 = vpop.permute.xlu1 %548  ;;  %v2825_v51 = vpop.permute.xlu0 %546 }
  0xcc   : > { %3691 = vst [vmem:[#allocation22_spill] sm:$0xff] %v2823_v50  ;;  %3692 = vst [vmem:[#allocation23_spill] sm:$0xff] %v2825_v51  ;;  %v2973_v51 = vld [vmem:[%s2427_s10 + $0x60] sm:$0xff] }
  0xcd   : > { %668 = vrot.lane.b32.xlu1 %v206_v63, %s2322_s21  ;;  %644 = vrot.lane.b32.xlu0 %v2703_v25, %s2322_s21  ;;  %v2847_v25 = vld [vmem:[%s2427_s10 + $0xa2] sm:$0xff] }
  0xcf   : > { %v2830_v4 = vpop.permute.xlu1 %552  ;;  %v2832_v60 = vpop.permute.xlu0 %550 }
  0xd0   : > { %3693 = vst [vmem:[#allocation24_spill] sm:$0xff] %v2830_v4  ;;  %3694 = vst [vmem:[#allocation25_spill] sm:$0xff] %v2832_v60 }
  0xd1   : > { %762 = vrot.lane.b32.xlu1 %v2508_v18, %s2323_s24  ;;  %738 = vrot.lane.b32.xlu0 %v2451_v6, %s2323_s24 }
  0xd3   : > { %v2838_v61 = vpop.permute.xlu1 %556  ;;  %v2840_v40 = vpop.permute.xlu0 %554 }
  0xd4   : > { %3695 = vst [vmem:[#allocation26_spill] sm:$0xff] %v2838_v61  ;;  %3696 = vst [vmem:[#allocation27_spill] sm:$0xff] %v2840_v40 }
  0xd5   : > { %1048 = vrot.lane.b32.xlu1 %v2518_v20, %s2326_s4  ;;  %1024 = vrot.lane.b32.xlu0 %v2461_v8, %s2326_s4 }
  0xd7   : > { %v2849_v28 = vpop.permute.xlu1 %560  ;;  %v2851_v63 = vpop.permute.xlu0 %558 }
  0xd8   : > { %3697 = vst [vmem:[#allocation28_spill] sm:$0xff] %v2849_v28  ;;  %3698 = vst [vmem:[#allocation29_spill] sm:$0xff] %v2851_v63  ;;  %v2874_v28 = vld [vmem:[%s2427_s10 + $0xaa] sm:$0xff] }
  0xd9   : > { %1142 = vrot.lane.b32.xlu1 %v2847_v25, %s2327_s9  ;;  %1118 = vrot.lane.b32.xlu0 %v2566_v33, %s2327_s9 }
  0xdb   : > { %v2857_v6 = vpop.permute.xlu1 %564  ;;  %v2859_v18 = vpop.permute.xlu0 %562 }
  0xdd   : > { %764 = vrot.lane.b32.xlu1 %v2521_v21, %s2323_s24  ;;  %740 = vrot.lane.b32.xlu0 %v2464_v9, %s2323_s24 }
  0xdf   : > { %v2865_v2 = vpop.permute.xlu1 %568  ;;  %v2867_v3 = vpop.permute.xlu0 %566 }
  0xe1   : > { %858 = vrot.lane.b32.xlu1 %v2756_v59, %s2324_s27  ;;  %834 = vrot.lane.b32.xlu0 %v2553_v30, %s2324_s27 }
  0xe3   : > { %v2876_v46 = vpop.permute.xlu1 %572  ;;  %v2878_v21 = vpop.permute.xlu0 %570 }
  0xe4   : > { %3699 = vst [vmem:[#allocation30_spill] sm:$0xff] %v2876_v46  ;;  %3700 = vst [vmem:[#allocation31_spill] sm:$0xff] %v2878_v21 }
  0xe5   : > { %1144 = vrot.lane.b32.xlu1 %v2874_v28, %s2327_s9  ;;  %1120 = vrot.lane.b32.xlu0 %v2563_v32, %s2327_s9 }
  0xe7   : > { %v2884_v9 = vpop.permute.xlu1 %658  ;;  %v2886_v45 = vpop.permute.xlu0 %634 }
  0xe9   : > { %836 = vrot.lane.b32.xlu1 %v2566_v33, %s2324_s27  ;;  %574 = vrot.lane.b32.xlu0 %v2729_v41, %s2321_s20  ;;  %v2904_v33 = vld [vmem:[%s2427_s10 + $0xb0] sm:$0xff] }
  0xea   : > { %3702 = vst [vmem:[#allocation33_spill] sm:$0xff] %v2904_v33 }
  0xeb   : > { %v2892_v30 = vpop.permute.xlu1 %660  ;;  %v2894_v63 = vpop.permute.xlu0 %636 }
  0xed   : > { %930 = vrot.lane.b32.xlu1 %v2897_v47, %s2325_s28  ;;  %860 = vrot.lane.b32.xlu0 %v2847_v25, %s2324_s27 }
  0xef   : > { %v755_v31 = vpop.permute.xlu1 %754  ;;  %v731_v61 = vpop.permute.xlu0 %730 }
  0xf1   : > { %576 = vrot.lane.b32.xlu1 %v2756_v59, %s2321_s20  ;;  %954 = vrot.lane.b32.xlu0 %v2904_v33, %s2325_s28 }
  0xf3   : > { %v2910_v41 = vpop.permute.xlu1 %756  ;;  %v2912_v38 = vpop.permute.xlu0 %732 }
  0xf5   : > { %670 = vrot.lane.b32.xlu1 %v2783_v44, %s2322_s21  ;;  %646 = vrot.lane.b32.xlu0 %v2809_v27, %s2322_s21 }
  0xf7   : > { %v851_v16 = vpop.permute.xlu1 %850  ;;  %v827_v40 = vpop.permute.xlu0 %826 }
  0xf9   : > { %956 = vrot.lane.b32.xlu1 %v2922_v14, %s2325_s28  ;;  %932 = vrot.lane.b32.xlu0 %v2919_v5, %s2325_s28 }
  0xfb   : > { %v2928_v59 = vpop.permute.xlu1 %852  ;;  %v2930_v19 = vpop.permute.xlu0 %828 }
  0xfd   : > { %1050 = vrot.lane.b32.xlu1 %v2531_v23, %s2326_s4  ;;  %1026 = vrot.lane.b32.xlu0 %v2474_v11, %s2326_s4 }
  0xff   : > { %v947_v44 = vpop.permute.xlu1 %946  ;;  %v923_v27 = vpop.permute.xlu0 %922 }
 0x101   : > { %672 = vrot.lane.b32.xlu1 %v2904_v33, %s2322_s21  ;;  %648 = vrot.lane.b32.xlu0 %v2897_v47, %s2322_s21  ;;  %v2957_v47 = vld [vmem:[%s2427_s10 + $0xb2] sm:$0xff] }
 0x103   : > { %v2940_v46 = vpop.permute.xlu1 %662  ;;  %v2942_v0 = vpop.permute.xlu0 %638 }
 0x105   : > { %766 = vrot.lane.b32.xlu1 %v2518_v20, %s2323_s24  ;;  %742 = vrot.lane.b32.xlu0 %v2461_v8, %s2323_s24 }
 0x107   : > { %v2948_v50 = vpop.permute.xlu1 %948  ;;  %v2950_v7 = vpop.permute.xlu0 %924 }
 0x109   : > { %1052 = vrot.lane.b32.xlu1 %v2528_v22, %s2326_s4  ;;  %1028 = vrot.lane.b32.xlu0 %v2471_v10, %s2326_s4 }
 0x10b   : > { %v1043_v33 = vpop.permute.xlu1 %1042  ;;  %v1019_v21 = vpop.permute.xlu0 %1018 }
 0x10d   : > { %1146 = vrot.lane.b32.xlu1 %v2957_v47, %s2327_s9  ;;  %1122 = vrot.lane.b32.xlu0 %v2576_v35, %s2327_s9 }
 0x10f   : > { %v2963_v8 = vpop.permute.xlu1 %664  ;;  %v2965_v20 = vpop.permute.xlu0 %640 }
 0x110   : > { %3703 = vst [vmem:[#allocation34_spill] sm:$0xff] %v2965_v20 }
 0x111   : > { %768 = vrot.lane.b32.xlu1 %v2531_v23, %s2323_s24  ;;  %744 = vrot.lane.b32.xlu0 %v2474_v11, %s2323_s24  ;;  %v1199_v23 = vsel %vm1186_vm0, %v2973_v51, %v2741_v54  ;;  %v1212_v11 = vsel %vm1211_vm1, %v1187_v24, %v2806_v26 }
 0x112   : > { %v1224_v60 = vsel %vm1211_vm1, %v1199_v23, %v2859_v18  ;;  %v1237_v1 = vsel %vm1236_vm2, %v1212_v11, %v2886_v45  ;;  %v1946_v11 = vld [vmem:[%s2427_s10 + $0xc0] sm:$0xff] }
 0x113   : > { %v2975_v17 = vpop.permute.xlu1 %758  ;;  %v2977_v4 = vpop.permute.xlu0 %734  ;;  %v1249_v53 = vsel %vm1236_vm2, %v1224_v60, %v2884_v9  ;;  %v1262_v20 = vsel %vm1261_vm3, %v1237_v1, %v731_v61 }
 0x114   : > { %v1287_v26 = vsel %vm1286_vm4, %v1262_v20, %v827_v40 }
 0x115   : > { %862 = vrot.lane.b32.xlu1 %v2874_v28, %s2324_s27  ;;  %838 = vrot.lane.b32.xlu0 %v2563_v32, %s2324_s27  ;;  %v1274_v32 = vsel %vm1261_vm3, %v1249_v53, %v755_v31  ;;  %v1312_v31 = vsel %vm1311_vm5, %v1287_v26, %v923_v27  ;;  %v3019_v27 = vld [vmem:[%s2427_s10 + $0x68] sm:$0xff] }
 0x116   : > { %v1299_v24 = vsel %vm1286_vm4, %v1274_v32, %v851_v16  ;;  %v1337_v61 = vsel %vm1336_vm6, %v1312_v31, %v1019_v21 }
 0x117   : > { %v1045_v54 = vpop.permute.xlu1 %1044  ;;  %v1021_v48 = vpop.permute.xlu0 %1020  ;;  %v1324_v45 = vsel %vm1311_vm5, %v1299_v24, %v947_v44  ;;  %v187_v44 = vld [vmem:[%s2427_s10 + $0x8] sm:$0xff] }
 0x118   : > { %v1349_v60 = vsel %vm1336_vm6, %v1324_v45, %v1043_v33  ;;  %v1188_v20 = vsel %vm1186_vm0, %v187_v44, %v2668_v58 }
 0x119   : > { %1148 = vrot.lane.b32.xlu1 %v2993_v62, %s2327_s9  ;;  %1124 = vrot.lane.b32.xlu0 %v2573_v34, %s2327_s9 }
 0x11b   : > { %v1139_v16 = vpop.permute.xlu1 %1138  ;;  %v1115_v18 = vpop.permute.xlu0 %1114 }
 0x11c   : > { %v1362_v40 = vsel %vm1361_vm7, %v1337_v61, %v1115_v18  ;;  %v1374_v9 = vsel %vm1361_vm7, %v1349_v60, %v1139_v16 }
 0x11d   : > { %840 = vrot.lane.b32.xlu1 %v2576_v35, %s2324_s27  ;;  %578 = vrot.lane.b32.xlu0 %v2847_v25, %s2321_s20  ;;  %v1200_v35 = vsel %vm1186_vm0, %v3019_v27, %v2739_v49  ;;  %v1213_v25 = vsel %vm1211_vm1, %v1188_v20, %v2804_v15 }
 0x11e   : > { %2079 = vmatprep.mubr.msk.f32.mxu0 %vm1402_vm8, %v1362_v40  ;;  %2097 = vmatprep.mubr.msk.f32.mxu1 %vm1402_vm8, %v1374_v9  ;;  %v1225_v23 = vsel %vm1211_vm1, %v1200_v35, %v2857_v6  ;;  %v1238_v53 = vsel %vm1236_vm2, %v1213_v25, %v2894_v63  ;;  %v1889_v35 = vld [vmem:[%s2427_s10 + $0x61] sm:$0xff] }
 0x11f   : > { %v3023_v21 = vpop.permute.xlu1 %760  ;;  %v3025_v33 = vpop.permute.xlu0 %736  ;;  %v1250_v58 = vsel %vm1236_vm2, %v1225_v23, %v2892_v30  ;;  %v1263_v15 = vsel %vm1261_vm3, %v1238_v53, %v2912_v38 }
 0x120   : > { %v1275_v32 = vsel %vm1261_vm3, %v1250_v58, %v2910_v41  ;;  %v1288_v30 = vsel %vm1286_vm4, %v1263_v15, %v2930_v19 }
 0x121   : > { %934 = vrot.lane.b32.xlu1 %v2973_v51, %s2325_s28  ;;  %864 = vrot.lane.b32.xlu0 %v2957_v47, %s2324_s27  ;;  %v1300_v6 = vsel %vm1286_vm4, %v1275_v32, %v2928_v59  ;;  %v1313_v41 = vsel %vm1311_vm5, %v1288_v30, %v2950_v7  ;;  %v3075_v7 = vld [vmem:[%s2427_s10 + $0xc8] sm:$0xff] }
 0x122   : > { %v1325_v63 = vsel %vm1311_vm5, %v1300_v6, %v2948_v50  ;;  %v1338_v59 = vsel %vm1336_vm6, %v1313_v41, %v1021_v48 }
 0x123   : > { %v3045_v49 = vpop.permute.xlu1 %854  ;;  %v3047_v1 = vpop.permute.xlu0 %830  ;;  %v1350_v38 = vsel %vm1336_vm6, %v1325_v63, %v1045_v54 }
 0x125   : > { %580 = vrot.lane.b32.xlu1 %v2874_v28, %s2321_s20  ;;  %958 = vrot.lane.b32.xlu0 %v1946_v11, %s2325_s28  ;;  %v1970_v28 = vld [vmem:[%s2427_s10 + $0xc1] sm:$0xff] }
 0x127   : > { %v1141_v24 = vpop.permute.xlu1 %1140  ;;  %v1117_v26 = vpop.permute.xlu0 %1116 }
 0x128   : > { %v1375_v19 = vsel %vm1361_vm7, %v1350_v38, %v1141_v24  ;;  %v1363_v45 = vsel %vm1361_vm7, %v1338_v59, %v1117_v26  ;;  %v1190_v24 = vsel %vm1186_vm0, %v2607_v43, %v2666_v57  ;;  %v1202_v26 = vsel %vm1186_vm0, %v2604_v42, %v2747_v55  ;;  %v3704_v57 = vld [vmem:[#allocation34_spill] sm:$0xff] }
 0x129   : > { %674 = vrot.lane.b32.xlu1 %v2922_v14, %s2322_s21  ;;  %650 = vrot.lane.b32.xlu0 %v2919_v5, %s2322_s21 }
 0x12a   : > { %2080 = vmatmul.mubr.msk.f32.vlgmr.msra.gmra.mrb[0].mxu0 %vm1402_vm8, %v1363_v45  ;;  %2098 = vmatmul.mubr.msk.f32.vlgmr.msra.gmra.mrb[0].mxu1 %vm1402_vm8, %v1375_v19  ;;  %v1227_v19 = vsel %vm1211_vm1, %v1202_v26, %v2865_v2  ;;  %v3710_v26 = vld [vmem:[#allocation7_spill] sm:$0xff] }
 0x12b   : > { %v3077_v50 = vpop.permute.xlu1 %856  ;;  %v3079_v48 = vpop.permute.xlu0 %832  ;;  %v1252_v43 = vsel %vm1236_vm2, %v1227_v19, %v2963_v8 }
 0x12d   : > { %960 = vrot.lane.b32.xlu1 %v3075_v7, %s2325_s28  ;;  %936 = vrot.lane.b32.xlu0 %v3019_v27, %s2325_s28 }
 0x12f   : > { %v951_v54 = vpop.permute.xlu1 %950  ;;  %v927_v31 = vpop.permute.xlu0 %926 }
 0x131   : > { %1054 = vrot.lane.b32.xlu1 %v1970_v28, %s2326_s4  ;;  %1030 = vrot.lane.b32.xlu0 %v2484_v13, %s2326_s4  ;;  %v3105_v13 = vld [vmem:[%s2427_s10 + $0xc9] sm:$0xff] }
 0x133   : > { %v3089_v60 = vpop.permute.xlu1 %666  ;;  %v3091_v61 = vpop.permute.xlu0 %642 }
 0x135   : > { %676 = vrot.lane.b32.xlu1 %v1946_v11, %s2322_s21  ;;  %652 = vrot.lane.b32.xlu0 %v2973_v51, %s2322_s21  ;;  %v1994_v51 = vld [vmem:[%s2427_s10 + $0xc2] sm:$0xff] }
 0x137   : > { %v3096_v16 = vpop.permute.xlu1 %952  ;;  %v3098_v18 = vpop.permute.xlu0 %928 }
 0x139   : > { %770 = vrot.lane.b32.xlu1 %v2528_v22, %s2323_s24  ;;  %746 = vrot.lane.b32.xlu0 %v2471_v10, %s2323_s24  ;;  %v188_v10 = vld [vmem:[%s2427_s10 + $0x10] sm:$0xff] }
 0x13a   : > { %v3121_v22 = vld [vmem:[%s2427_s10 + $0x70] sm:$0xff] }
 0x13b   : > { %v1047_v40 = vpop.permute.xlu1 %1046  ;;  %v1023_v9 = vpop.permute.xlu0 %1022  ;;  %v1201_v11 = vsel %vm1186_vm0, %v3121_v22, %v2749_v56 }
 0x13c   : > { %v1226_v53 = vsel %vm1211_vm1, %v1201_v11, %v2867_v3  ;;  %v1972_v11 = vld [vmem:[%s2427_s10 + $0xd1] sm:$0xff] }
 0x13d   : > { %1056 = vrot.lane.b32.xlu1 %v3105_v13, %s2326_s4  ;;  %1032 = vrot.lane.b32.xlu0 %v2481_v12, %s2326_s4  ;;  %v1189_v12 = vsel %vm1186_vm0, %v188_v10, %v2652_v52  ;;  %v1251_v32 = vsel %vm1236_vm2, %v1226_v53, %v2940_v46  ;;  %v1937_v10 = vld [vmem:[%s2427_s10 + $0x78] sm:$0xff] }
 0x13e   : > { %v1214_v58 = vsel %vm1211_vm1, %v1189_v12, %v2817_v39  ;;  %v1276_v56 = vsel %vm1261_vm3, %v1251_v32, %v2975_v17  ;;  %v3158_v17 = vld [vmem:[%s2427_s10 + $0xca] sm:$0xff] }
 0x13f   : > { %v3112_v44 = vpop.permute.xlu1 %668  ;;  %v3114_v20 = vpop.permute.xlu0 %644  ;;  %v1239_v52 = vsel %vm1236_vm2, %v1214_v58, %v2942_v0  ;;  %v1301_v39 = vsel %vm1286_vm4, %v1276_v56, %v3045_v49  ;;  %v1960_v58 = vld [vmem:[%s2427_s10 + $0x71] sm:$0xff] }
 0x140   : > { %v1264_v30 = vsel %vm1261_vm3, %v1239_v52, %v2977_v4  ;;  %v1326_v0 = vsel %vm1311_vm5, %v1301_v39, %v951_v54  ;;  %v3706_v52 = vld [vmem:[#allocation15_spill] sm:$0xff] }
 0x141   : > { %1150 = vrot.lane.b32.xlu1 %v1994_v51, %s2327_s9  ;;  %1126 = vrot.lane.b32.xlu0 %v2586_v37, %s2327_s9  ;;  %v1289_v3 = vsel %vm1286_vm4, %v1264_v30, %v3047_v1  ;;  %v1351_v4 = vsel %vm1336_vm6, %v1326_v0, %v1047_v40  ;;  %v1890_v0 = vld [vmem:[%s2427_s10 + $0x69] sm:$0xff] }
 0x142   : > { %v1314_v46 = vsel %vm1311_vm5, %v1289_v3, %v927_v31 }
 0x143   : > { %v3124_v25 = vpop.permute.xlu1 %762  ;;  %v3126_v23 = vpop.permute.xlu0 %738  ;;  %v1339_v63 = vsel %vm1336_vm6, %v1314_v46, %v1023_v9  ;;  %v3705_v9 = vld [vmem:[#allocation16_spill] sm:$0xff] }
 0x145   : > { %772 = vrot.lane.b32.xlu1 %v1970_v28, %s2323_s24  ;;  %748 = vrot.lane.b32.xlu0 %v1889_v35, %s2323_s24  ;;  %v1948_v28 = vld [vmem:[%s2427_s10 + $0xd0] sm:$0xff] }
 0x147   : > { %v1049_v15 = vpop.permute.xlu1 %1048  ;;  %v1025_v6 = vpop.permute.xlu0 %1024 }
 0x149   : > { %866 = vrot.lane.b32.xlu1 %v2993_v62, %s2324_s27  ;;  %842 = vrot.lane.b32.xlu0 %v2573_v34, %s2324_s27 }
 0x14b   : > { %v1143_v49 = vpop.permute.xlu1 %1142  ;;  %v1119_v41 = vpop.permute.xlu0 %1118 }
 0x14c   : > { %v1376_v1 = vsel %vm1361_vm7, %v1351_v4, %v1143_v49  ;;  %v1364_v38 = vsel %vm1361_vm7, %v1339_v63, %v1119_v41  ;;  %v1973_v63 = vld [vmem:[%s2427_s10 + $0xd9] sm:$0xff] }
 0x14d   : > { %1152 = vrot.lane.b32.xlu1 %v3158_v17, %s2327_s9  ;;  %1128 = vrot.lane.b32.xlu0 %v2583_v36, %s2327_s9  ;;  %v1215_v36 = vsel %vm1211_vm1, %v1190_v24, %v2815_v29  ;;  %v1961_v49 = vld [vmem:[%s2427_s10 + $0x79] sm:$0xff]  ;;  %v3709_v24 = vld [vmem:[#allocation24_spill] sm:$0xff] }
 0x14e   : > { %2082 = vmatprep.mubr.msk.f32.mxu0 %vm1402_vm8, %v1364_v38  ;;  %2100 = vmatprep.mubr.msk.f32.mxu1 %vm1402_vm8, %v1376_v1  ;;  %v1240_v45 = vsel %vm1236_vm2, %v1215_v36, %v3704_v57  ;;  %v1984_v38 = vld [vmem:[%s2427_s10 + $0x72] sm:$0xff]  ;;  %v1219_v36 = vsel %vm1211_vm1, %v3710_v26, %v3709_v24 }
 0x14f   : > { %v3170_v34 = vpop.permute.xlu1 %764  ;;  %v3172_v59 = vpop.permute.xlu0 %740 }
 0x151   : > { %844 = vrot.lane.b32.xlu1 %v2586_v37, %s2324_s27  ;;  %582 = vrot.lane.b32.xlu0 %v2957_v47, %s2321_s20  ;;  %v1277_v37 = vsel %vm1261_vm3, %v1252_v43, %v3023_v21  ;;  %v1265_v47 = vsel %vm1261_vm3, %v1240_v45, %v3025_v33 }
 0x152   : > { %v1302_v29 = vsel %vm1286_vm4, %v1277_v37, %v3077_v50  ;;  %v1290_v2 = vsel %vm1286_vm4, %v1265_v47, %v3079_v48  ;;  %v3711_v47 = vld [vmem:[#allocation23_spill] sm:$0xff] }
 0x153   : > { %v3192_v42 = vpop.permute.xlu1 %858  ;;  %v3194_v55 = vpop.permute.xlu0 %834  ;;  %v1327_v8 = vsel %vm1311_vm5, %v1302_v29, %v3096_v16  ;;  %v1315_v21 = vsel %vm1311_vm5, %v1290_v2, %v3098_v18  ;;  %v3712_v29 = vld [vmem:[#allocation6_spill] sm:$0xff] }
 0x154   : > { %v1352_v33 = vsel %vm1336_vm6, %v1327_v8, %v1049_v15  ;;  %v1340_v50 = vsel %vm1336_vm6, %v1315_v21, %v1025_v6  ;;  %v3708_v15 = vld [vmem:[#allocation8_spill] sm:$0xff]  ;;  %v1216_v2 = vsel %vm1211_vm1, %v3712_v29, %v3711_v47  ;;  %v3713_v8 = vld [vmem:[#allocation31_spill] sm:$0xff]  ;;  %v3714_v21 = vld [vmem:[#allocation14_spill] sm:$0xff] }
 0x155   : > { %938 = vrot.lane.b32.xlu1 %v3121_v22, %s2325_s28  ;;  %868 = vrot.lane.b32.xlu0 %v1994_v51, %s2324_s27  ;;  %v3719_v29 = vld [vmem:[#allocation18_spill] sm:$0xff] }
 0x157   : > { %v1145_v54 = vpop.permute.xlu1 %1144  ;;  %v1121_v48 = vpop.permute.xlu0 %1120 }
 0x158   : > { %v1377_v31 = vsel %vm1361_vm7, %v1352_v33, %v1145_v54  ;;  %v1365_v40 = vsel %vm1361_vm7, %v1340_v50, %v1121_v48  ;;  %v1914_v33 = vld [vmem:[%s2427_s10 + $0x6a] sm:$0xff]  ;;  %v1241_v54 = vsel %vm1236_vm2, %v1216_v2, %v3091_v61 }
 0x159   : > { %584 = vrot.lane.b32.xlu1 %v2993_v62, %s2321_s20  ;;  %962 = vrot.lane.b32.xlu0 %v1948_v28, %s2325_s28  ;;  %v1949_v62 = vld [vmem:[%s2427_s10 + $0xd8] sm:$0xff] }
 0x15a   : > { %2083 = vmatmul.mubr.msk.f32.gmra.mrb[2].mxu0 %vm1402_vm8, %v1365_v40  ;;  %2101 = vmatmul.mubr.msk.f32.gmra.mrb[2].mxu1 %vm1402_vm8, %v1377_v31 }
 0x15b   : > { %v3221_v16 = vpop.permute.xlu1 %836  ;;  %v575_v18 = vpop.permute.xlu0 %574 }
 0x15c   : > { %v1230_v51 = vsel %vm1211_vm1, %v3705_v9, %v575_v18  ;;  %v1266_v18 = vsel %vm1261_vm3, %v1241_v54, %v3126_v23  ;;  %v1986_v54 = vld [vmem:[%s2427_s10 + $0x82] sm:$0xff] }
 0x15d   : > { %678 = vrot.lane.b32.xlu1 %v3075_v7, %s2322_s21  ;;  %654 = vrot.lane.b32.xlu0 %v3019_v27, %s2322_s21  ;;  %v3707_v27 = vld [vmem:[#allocation25_spill] sm:$0xff] }
 0x15e   : > { %v1218_v6 = vsel %vm1211_vm1, %v3708_v15, %v3707_v27  ;;  %v3718_v27 = vld [vmem:[#allocation13_spill] sm:$0xff] }
 0x15f   : > { %v931_v35 = vpop.permute.xlu1 %930  ;;  %v3231_v12 = vpop.permute.xlu0 %860 }
 0x161   : > { %964 = vrot.lane.b32.xlu1 %v1949_v62, %s2325_s28  ;;  %940 = vrot.lane.b32.xlu0 %v1937_v10, %s2325_s28  ;;  %v1997_v62 = vld [vmem:[%s2427_s10 + $0xda] sm:$0xff] }
 0x163   : > { %v577_v53 = vpop.permute.xlu1 %576  ;;  %v955_v32 = vpop.permute.xlu0 %954 }
 0x164   : > { %v1231_v7 = vsel %vm1211_vm1, %v3706_v52, %v577_v53  ;;  %v3715_v53 = vld [vmem:[#allocation22_spill] sm:$0xff] }
 0x165   : > { %1058 = vrot.lane.b32.xlu1 %v1972_v11, %s2326_s4  ;;  %1034 = vrot.lane.b32.xlu0 %v1960_v58, %s2326_s4 }
 0x167   : > { %v671_v56 = vpop.permute.xlu1 %670  ;;  %v647_v30 = vpop.permute.xlu0 %646 }
 0x168   : > { %v3245_v39 = vsel %vm1236_vm2, %v1230_v51, %v671_v56  ;;  %v3248_v3 = vsel %vm1236_vm2, %v1218_v6, %v647_v30  ;;  %v1291_v51 = vsel %vm1286_vm4, %v1266_v18, %v3194_v55  ;;  %v1950_v6 = vld [vmem:[%s2427_s10 + $0xe0] sm:$0xff] }
 0x169   : > { %680 = vrot.lane.b32.xlu1 %v1948_v28, %s2322_s21  ;;  %656 = vrot.lane.b32.xlu0 %v3121_v22, %s2322_s21  ;;  %v1996_v22 = vld [vmem:[%s2427_s10 + $0xd2] sm:$0xff]  ;;  %v1228_v28 = vsel %vm1211_vm1, %v3714_v21, %v3713_v8  ;;  %v1938_v56 = vld [vmem:[%s2427_s10 + $0x80] sm:$0xff] }
 0x16a   : > { %v1253_v50 = vsel %vm1236_vm2, %v1228_v28, %v3089_v60  ;;  %v1316_v60 = vsel %vm1311_vm5, %v1291_v51, %v931_v35  ;;  %v1975_v8 = vld [vmem:[%s2427_s10 + $0xe9] sm:$0xff] }
 0x16b   : > { %v3254_v46 = vpop.permute.xlu1 %956  ;;  %v3256_v4 = vpop.permute.xlu0 %932  ;;  %v1278_v40 = vsel %vm1261_vm3, %v1253_v50, %v3124_v25  ;;  %v1985_v25 = vld [vmem:[%s2427_s10 + $0x7a] sm:$0xff]  ;;  %v1963_v21 = vld [vmem:[%s2427_s10 + $0x89] sm:$0xff] }
 0x16c   : > { %v1303_v9 = vsel %vm1286_vm4, %v1278_v40, %v3192_v42  ;;  %v1998_v50 = vld [vmem:[%s2427_s10 + $0xe2] sm:$0xff]  ;;  %v3720_v40 = vld [vmem:[#allocation17_spill] sm:$0xff]  ;;  %v1987_v51 = vld [vmem:[%s2427_s10 + $0x8a] sm:$0xff] }
 0x16d   : > { %774 = vrot.lane.b32.xlu1 %v3105_v13, %s2323_s24  ;;  %750 = vrot.lane.b32.xlu0 %v1890_v0, %s2323_s24  ;;  %v1328_v61 = vsel %vm1311_vm5, %v1303_v9, %v955_v32  ;;  %v3716_v32 = vld [vmem:[#allocation5_spill] sm:$0xff]  ;;  %v1999_v9 = vld [vmem:[%s2427_s10 + $0xea] sm:$0xff] }
 0x16e   : > { %v1217_v52 = vsel %vm1211_vm1, %v3716_v32, %v3715_v53  ;;  %v3723_v32 = vld [vmem:[#allocation9_spill] sm:$0xff] }
 0x16f   : > { %v1051_v41 = vpop.permute.xlu1 %1050  ;;  %v1027_v1 = vpop.permute.xlu0 %1026  ;;  %v1242_v0 = vsel %vm1236_vm2, %v1217_v52, %v3114_v20  ;;  %v3724_v52 = vld [vmem:[#allocation21_spill] sm:$0xff] }
 0x170   : > { %v1353_v10 = vsel %vm1336_vm6, %v1328_v61, %v1051_v41  ;;  %v1341_v23 = vsel %vm1336_vm6, %v1316_v60, %v1027_v1  ;;  %v1267_v1 = vsel %vm1261_vm3, %v1242_v0, %v3172_v59  ;;  %v1939_v59 = vld [vmem:[%s2427_s10 + $0x88] sm:$0xff]  ;;  %v3722_v61 = vld [vmem:[#allocation10_spill] sm:$0xff] }
 0x171   : > { %1060 = vrot.lane.b32.xlu1 %v1973_v63, %s2326_s4  ;;  %1036 = vrot.lane.b32.xlu0 %v1961_v49, %s2326_s4  ;;  %v3721_v60 = vld [vmem:[#allocation27_spill] sm:$0xff] }
 0x173   : > { %v673_v19 = vpop.permute.xlu1 %672  ;;  %v649_v43 = vpop.permute.xlu0 %648 }
 0x174   : > { %v3271_v13 = vsel %vm1236_vm2, %v1231_v7, %v673_v19  ;;  %v3274_v57 = vsel %vm1236_vm2, %v1219_v36, %v649_v43  ;;  %v3717_v7 = vld [vmem:[#allocation30_spill] sm:$0xff] }
 0x175   : > { %1154 = vrot.lane.b32.xlu1 %v1996_v22, %s2327_s9  ;;  %1130 = vrot.lane.b32.xlu0 %v1984_v38, %s2327_s9  ;;  %v1229_v15 = vsel %vm1211_vm1, %v3718_v27, %v3717_v7  ;;  %v1196_v7 = vsel %vm1186_vm0, %v3724_v52, %v3723_v32  ;;  %v3725_v27 = vld [vmem:[#allocation26_spill] sm:$0xff] }
 0x176   : > { %v1254_v30 = vsel %vm1236_vm2, %v1229_v15, %v3112_v44  ;;  %v1221_v15 = vsel %vm1211_vm1, %v1196_v7, %v3725_v27 }
 0x177   : > { %v3278_v45 = vpop.permute.xlu1 %766  ;;  %v3280_v37 = vpop.permute.xlu0 %742  ;;  %v1279_v41 = vsel %vm1261_vm3, %v1254_v30, %v3170_v34  ;;  %v1951_v34 = vld [vmem:[%s2427_s10 + $0xe8] sm:$0xff] }
 0x179   : > { %776 = vrot.lane.b32.xlu1 %v1972_v11, %s2323_s24  ;;  %752 = vrot.lane.b32.xlu0 %v1960_v58, %s2323_s24 }
 0x17b   : > { %v1053_v48 = vpop.permute.xlu1 %1052  ;;  %v1029_v31 = vpop.permute.xlu0 %1028 }
 0x17d   : > { %870 = vrot.lane.b32.xlu1 %v3158_v17, %s2324_s27  ;;  %846 = vrot.lane.b32.xlu0 %v1914_v33, %s2324_s27 }
 0x17f   : > { %v1147_v42 = vpop.permute.xlu1 %1146  ;;  %v1123_v11 = vpop.permute.xlu0 %1122 }
 0x180   : > { %v1378_v55 = vsel %vm1361_vm7, %v1353_v10, %v1147_v42  ;;  %v1366_v17 = vsel %vm1361_vm7, %v1341_v23, %v1123_v11 }
 0x181   : > { %1156 = vrot.lane.b32.xlu1 %v1997_v62, %s2327_s9  ;;  %1132 = vrot.lane.b32.xlu0 %v1985_v25, %s2327_s9  ;;  %v1220_v62 = vsel %vm1211_vm1, %v3722_v61, %v3721_v60 }
 0x182   : > { %2085 = vmatprep.mubr.msk.f32.mxu0 %vm1402_vm8, %v1366_v17  ;;  %2103 = vmatprep.mubr.msk.f32.mxu1 %vm1402_vm8, %v1378_v55 }
 0x183   : > { %v3318_v35 = vpop.permute.xlu1 %768  ;;  %v3320_v58 = vpop.permute.xlu0 %744 }
 0x185   : > { %872 = vrot.lane.b32.xlu1 %v1996_v22, %s2324_s27  ;;  %848 = vrot.lane.b32.xlu0 %v1984_v38, %s2324_s27  ;;  %v1292_v22 = vsel %vm1286_vm4, %v1267_v1, %v3221_v16  ;;  %v1304_v38 = vsel %vm1286_vm4, %v1279_v41, %v3231_v12 }
 0x186   : > { %v1329_v44 = vsel %vm1311_vm5, %v1304_v38, %v3254_v46  ;;  %v1317_v20 = vsel %vm1311_vm5, %v1292_v22, %v3256_v4  ;;  %v1974_v46 = vld [vmem:[%s2427_s10 + $0xe1] sm:$0xff] }
 0x187   : > { %v3336_v63 = vpop.permute.xlu1 %862  ;;  %v3338_v49 = vpop.permute.xlu0 %838  ;;  %v1354_v24 = vsel %vm1336_vm6, %v1329_v44, %v1053_v48  ;;  %v1342_v16 = vsel %vm1336_vm6, %v1317_v20, %v1029_v31  ;;  %v1962_v4 = vld [vmem:[%s2427_s10 + $0x81] sm:$0xff]  ;;  %v1280_v44 = vsel %vm1261_vm3, %v3245_v39, %v3278_v45  ;;  %v1268_v20 = vsel %vm1261_vm3, %v3248_v3, %v3280_v37  ;;  %s175_s10 = sand.u32 1, %s2294_s13  }
 0x188   : > { %s2141_s20 = smul.u32 192, %s175_s10  ;;  %s3612_s8 = scalar_lea.sflag [#allocation3], %s175_s10 }
 0x189   : > { %966 = vrot.lane.b32.xlu1 %v1950_v6, %s2325_s28  ;;  %942 = vrot.lane.b32.xlu0 %v1938_v56, %s2325_s28 }
 0x18a   : > { %s3502_s27 = scalar_lea.vmem [#allocation2], %s2141_s20  ;;  %s2328_s20 = smov [#allocation2]  }
 0x18b   : > { %v1149_v12 = vpop.permute.xlu1 %1148  ;;  %v1125_v26 = vpop.permute.xlu0 %1124  ;;  %s1700_s5 = sshll.u32 %s3502_s27, 4  ;;  %s2228_s21 = sshll.u32 %s2328_s20, 4  ;;  %s3597_s5 = int_to_ptr.vmem [resolvable:$true] %s1700_s5  ;;  %s2229_s21 = int_to_ptr.vmem [resolvable:$false] %s2228_s21 }
 0x18c   : > { %v1379_v36 = vsel %vm1361_vm7, %v1354_v24, %v1149_v12  ;;  %v1367_v19 = vsel %vm1361_vm7, %v1342_v16, %v1125_v26  ;;  %s2230_s24 = scalar_lea.vmem %s2229_s21, 6144  ;;  %p2231_p2 = scmp.lt.s32.totalorder %s3597_s5, %s2229_s21 }
 0x18d   : > { %968 = vrot.lane.b32.xlu1 %v1951_v34, %s2325_s28  ;;  %944 = vrot.lane.b32.xlu0 %v1939_v59, %s2325_s28  ;;  %v1305_v34 = vsel %vm1286_vm4, %v1280_v44, %v3336_v63  ;;  %v1293_v59 = vsel %vm1286_vm4, %v1268_v20, %v3338_v49  ;;  %s1692_s28 = smul.u32 24, %s2302_s15 }
 0x18e   : > { %2086 = vmatmul.mubr.msk.f32.gmra.mrb[4].mxu0 %vm1402_vm8, %v1367_v19  ;;  %2104 = vmatmul.mubr.msk.f32.gmra.mrb[4].mxu1 %vm1402_vm8, %v1379_v36 }
 0x18f   : > { %v841_v43 = vpop.permute.xlu1 %840  ;;  %v579_v47 = vpop.permute.xlu0 %578 }
 0x190   : > { %v1232_v2 = vsel %vm1211_vm1, %v3719_v29, %v579_v47 }
 0x191   : > { %1062 = vrot.lane.b32.xlu1 %v1974_v46, %s2326_s4  ;;  %1038 = vrot.lane.b32.xlu0 %v1962_v4, %s2326_s4  ;;  %v1281_v46 = vsel %vm1261_vm3, %v3271_v13, %v3318_v35  ;;  %v1269_v4 = vsel %vm1261_vm3, %v3274_v57, %v3320_v58  ;;  %v3726_v57 = vld [vmem:[#allocation20_spill] sm:$0xff]  ;;  %v3727_v58 = vld [vmem:[#allocation33_spill] sm:$0xff] }
 0x192   : > { %v1294_v47 = vsel %vm1286_vm4, %v1269_v4, %v841_v43  ;;  %v1209_v43 = vsel %vm1186_vm0, %v3727_v58, %v3726_v57 }
 0x193   : > { %v935_v28 = vpop.permute.xlu1 %934  ;;  %v865_v33 = vpop.permute.xlu0 %864 }
 0x194   : > { %v1318_v24 = vsel %vm1311_vm5, %v1293_v59, %v935_v28  ;;  %v1306_v29 = vsel %vm1286_vm4, %v1281_v46, %v865_v33 }
 0x195   : > { %1064 = vrot.lane.b32.xlu1 %v1975_v8, %s2326_s4  ;;  %1040 = vrot.lane.b32.xlu0 %v1963_v21, %s2326_s4  ;;  %s2143_s4 = smul.u32 48, %s2306_s16 }
 0x197   : > { %v581_v48 = vpop.permute.xlu1 %580  ;;  %v959_v31 = vpop.permute.xlu0 %958  ;;  %s1697_s29 = sadd.s32 %s2143_s4, %s1692_s28 }
 0x198   : > { %v1233_v18 = vsel %vm1211_vm1, %v3720_v40, %v581_v48  ;;  %v1330_v16 = vsel %vm1311_vm5, %v1305_v34, %v959_v31  ;;  %s2025_s6 = sshll.u32 %s1697_s29, 7 }
 0x199   : > { %1158 = vrot.lane.b32.xlu1 %v1998_v50, %s2327_s9  ;;  %1134 = vrot.lane.b32.xlu0 %v1986_v54, %s2327_s9  ;;  %s3604_s7 = scalar_lea.hbm %s3668_s3, %s2025_s6 }
 0x19b   : > { %v675_v25 = vpop.permute.xlu1 %674  ;;  %v651_v10 = vpop.permute.xlu0 %650 }
 0x19c   : > { %v3386_v23 = vsel %vm1236_vm2, %v1232_v2, %v675_v25  ;;  %v3389_v42 = vsel %vm1236_vm2, %v1220_v62, %v651_v10 }
 0x19d   : > { %1160 = vrot.lane.b32.xlu1 %v1999_v9, %s2327_s9  ;;  %1136 = vrot.lane.b32.xlu0 %v1987_v51, %s2327_s9  ;;  %s2224_s9 = scalar_lea.vmem %s3597_s5, 3072 }
 0x19e   : > { %p2225_p13 = scmp.ne.s32.totalorder %s3597_s5, %s2224_s9  ;;  %p2232_p4 = scmp.lt.s32.totalorder %s2230_s24, %s2224_s9 }
 0x19f   : > { %v961_v11 = vpop.permute.xlu1 %960  ;;  %v937_v55 = vpop.permute.xlu0 %936 }
 0x1a0   : > { %v1331_v2 = vsel %vm1311_vm5, %v1306_v29, %v961_v11  ;;  %v1319_v8 = vsel %vm1311_vm5, %v1294_v47, %v937_v55  ;;  %p2226_p0 = pnand %p2225_p13, %p2401_p3  ;;  %p2233_p5 = por %p2232_p4, %p2231_p2 }
 0x1a2   : > { %p2227_p1 = pneg %p2226_p0 }
 0x1a3   : > { %v1055_v17 = vpop.permute.xlu1 %1054  ;;  %v1031_v53 = vpop.permute.xlu0 %1030 }
 0x1a4   : > { %v1355_v12 = vsel %vm1336_vm6, %v1330_v16, %v1055_v17  ;;  %v1343_v26 = vsel %vm1336_vm6, %v1318_v24, %v1031_v53  ;;  %p2234_p6 = pnand %p2233_p5, %p2227_p1 }
 0x1a7   : > { %v677_v6 = vpop.permute.xlu1 %676  ;;  %v653_v56 = vpop.permute.xlu0 %652 }
 0x1a8   : > { %v3399_v30 = vsel %vm1236_vm2, %v1233_v18, %v677_v6  ;;  %v3402_v0 = vsel %vm1236_vm2, %v1221_v15, %v653_v56 }
 0x1ab   : > { %v771_v41 = vpop.permute.xlu1 %770  ;;  %v747_v1 = vpop.permute.xlu0 %746 }
 0x1ac   : > { %v1282_v27 = vsel %vm1261_vm3, %v3386_v23, %v771_v41  ;;  %v1270_v15 = vsel %vm1261_vm3, %v3389_v42, %v747_v1 }
 0x1af   : > { %v1057_v22 = vpop.permute.xlu1 %1056  ;;  %v1033_v38 = vpop.permute.xlu0 %1032 }
 0x1b0   : > { %v1356_v21 = vsel %vm1336_vm6, %v1331_v2, %v1057_v22  ;;  %v1344_v28 = vsel %vm1336_vm6, %v1319_v8, %v1033_v38  ;;  %v3496_v2 = vld [vmem:[%s3667_s2] ss:$0 sm:$0xff] }
 0x1b3   : > { %v1151_v36 = vpop.permute.xlu1 %1150  ;;  %v1127_v39 = vpop.permute.xlu0 %1126 }
 0x1b4   : > { %v1380_v45 = vsel %vm1361_vm7, %v1355_v12, %v1151_v36  ;;  %v1368_v3 = vsel %vm1361_vm7, %v1343_v26, %v1127_v39 }
 0x1b5   : > { %2088 = vmatprep.mubr.msk.f32.mxu0 %vm1402_vm8, %v1368_v3  ;;  %2106 = vmatprep.mubr.msk.f32.mxu1 %vm1402_vm8, %v1380_v45 }
 0x1b7   : > { %v773_v37 = vpop.permute.xlu1 %772  ;;  %v749_v63 = vpop.permute.xlu0 %748 }
 0x1b8   : > { %v1283_v12 = vsel %vm1261_vm3, %v3399_v30, %v773_v37  ;;  %v1271_v26 = vsel %vm1261_vm3, %v3402_v0, %v749_v63 }
 0x1bb   : > { %v867_v49 = vpop.permute.xlu1 %866  ;;  %v843_v19 = vpop.permute.xlu0 %842 }
 0x1bc   : > { %v1307_v6 = vsel %vm1286_vm4, %v1282_v27, %v867_v49  ;;  %v1295_v56 = vsel %vm1286_vm4, %v1270_v15, %v843_v19 }
 0x1bf   : > { %v1153_v50 = vpop.permute.xlu1 %1152  ;;  %v1129_v54 = vpop.permute.xlu0 %1128 }
 0x1c0   : > { %v1381_v13 = vsel %vm1361_vm7, %v1356_v21, %v1153_v50  ;;  %v1369_v35 = vsel %vm1361_vm7, %v1344_v28, %v1129_v54 }
 0x1c1   : > { %2089 = vmatmul.mubr.msk.f32.gmra.mrb[6].mxu0 %vm1402_vm8, %v1369_v35  ;;  %2107 = vmatmul.mubr.msk.f32.gmra.mrb[6].mxu1 %vm1402_vm8, %v1381_v13 }
 0x1c3   : > { %v845_v33 = vpop.permute.xlu1 %844  ;;  %v583_v48 = vpop.permute.xlu0 %582 }
 0x1c4   : > { %v3442_v31 = vsel %vm1211_vm1, %v1209_v43, %v583_v48  ;;  %v1296_v36 = vsel %vm1286_vm4, %v1271_v26, %v845_v33 }
 0x1c7   : > { %v939_v40 = vpop.permute.xlu1 %938  ;;  %v869_v18 = vpop.permute.xlu0 %868 }
 0x1c8   : > { %v1320_v22 = vsel %vm1311_vm5, %v1295_v56, %v939_v40  ;;  %v1308_v39 = vsel %vm1286_vm4, %v1283_v12, %v869_v18  ;;  %v3728_v40 = vld [vmem:[#allocation12_spill] sm:$0xff] }
 0x1c9   : > { %v3729_v18 = vld [vmem:[#allocation32_spill] sm:$0xff] }
 0x1cb   : > { %v3444_v9 = vpop.permute.xlu1 %584  ;;  %v963_v51 = vpop.permute.xlu0 %962 }
 0x1cc   : > { %v1332_v38 = vsel %vm1311_vm5, %v1307_v6, %v963_v51  ;;  %v1197_v51 = vsel %vm1186_vm0, %v3729_v18, %v3728_v40  ;;  %v3731_v6 = vld [vmem:[#allocation11_spill] sm:$0xff] }
 0x1cd   : > { %v1198_v56 = vsel %vm1186_vm0, %v2919_v5, %v3731_v6 }
 0x1cf   : > { %v3446_v60 = vpop.permute.xlu1 %678  ;;  %v3448_v61 = vpop.permute.xlu0 %654 }
 0x1d3   : > { %v965_v62 = vpop.permute.xlu1 %964  ;;  %v941_v25 = vpop.permute.xlu0 %940 }
 0x1d4   : > { %v1333_v45 = vsel %vm1311_vm5, %v1308_v39, %v965_v62  ;;  %v1321_v3 = vsel %vm1311_vm5, %v1296_v36, %v941_v25  ;;  %v3730_v62 = vld [vmem:[#allocation29_spill] sm:$0xff] }
 0x1d5   : > { %v1222_v25 = vsel %vm1211_vm1, %v1197_v51, %v3730_v62 }
 0x1d7   : > { %v1059_v10 = vpop.permute.xlu1 %1058  ;;  %v1035_v11 = vpop.permute.xlu0 %1034 }
 0x1d8   : > { %v1357_v44 = vsel %vm1336_vm6, %v1332_v38, %v1059_v10  ;;  %v1345_v20 = vsel %vm1336_vm6, %v1320_v22, %v1035_v11  ;;  %v1259_v10 = vsel %vm1236_vm2, %v3442_v31, %v3446_v60  ;;  %v1247_v11 = vsel %vm1236_vm2, %v1222_v25, %v3448_v61  ;;  %v3732_v22 = vld [vmem:[#allocation19_spill] sm:$0xff]  ;;  %v3733_v61 = vld [vmem:[#allocation28_spill] sm:$0xff] }
 0x1d9   : > { %v1210_v38 = vsel %vm1186_vm0, %v2922_v14, %v3732_v22 }
 0x1db   : > { %v3450_v55 = vpop.permute.xlu1 %680  ;;  %v3452_v17 = vpop.permute.xlu0 %656 }
 0x1df   : > { %v3454_v53 = vpop.permute.xlu1 %774  ;;  %v3456_v32 = vpop.permute.xlu0 %750 }
 0x1e0   : > { %v1284_v27 = vsel %vm1261_vm3, %v1259_v10, %v3454_v53  ;;  %v1272_v15 = vsel %vm1261_vm3, %v1247_v11, %v3456_v32  ;;  %v1235_v53 = vsel %vm1211_vm1, %v1210_v38, %v3444_v9 }
 0x1e1   : > { %v1260_v5 = vsel %vm1236_vm2, %v1235_v53, %v3450_v55 }
 0x1e3   : > { %v1061_v52 = vpop.permute.xlu1 %1060  ;;  %v1037_v7 = vpop.permute.xlu0 %1036 }
 0x1e4   : > { %v1358_v49 = vsel %vm1336_vm6, %v1333_v45, %v1061_v52  ;;  %v1346_v19 = vsel %vm1336_vm6, %v1321_v3, %v1037_v7 }
 0x1e7   : > { %v1155_v34 = vpop.permute.xlu1 %1154  ;;  %v1131_v59 = vpop.permute.xlu0 %1130 }
 0x1e8   : > { %v1382_v24 = vsel %vm1361_vm7, %v1357_v44, %v1155_v34  ;;  %v1370_v23 = vsel %vm1361_vm7, %v1345_v20, %v1131_v59  ;;  %v1223_v44 = vsel %vm1211_vm1, %v1198_v56, %v3733_v61 }
 0x1e9   : > { %2091 = vmatprep.mubr.msk.f32.mxu0 %vm1402_vm8, %v1370_v23  ;;  %2109 = vmatprep.mubr.msk.f32.mxu1 %vm1402_vm8, %v1382_v24  ;;  %v1248_v14 = vsel %vm1236_vm2, %v1223_v44, %v3452_v17 }
 0x1eb   : > { %v3472_v42 = vpop.permute.xlu1 %776  ;;  %v3474_v41 = vpop.permute.xlu0 %752 }
 0x1ec   : > { %v1273_v9 = vsel %vm1261_vm3, %v1248_v14, %v3474_v41 }
 0x1ef   : > { %v871_v1 = vpop.permute.xlu1 %870  ;;  %v847_v16 = vpop.permute.xlu0 %846 }
 0x1f0   : > { %v1309_v31 = vsel %vm1286_vm4, %v1284_v27, %v871_v1  ;;  %v1297_v60 = vsel %vm1286_vm4, %v1272_v15, %v847_v16  ;;  %v1285_v1 = vsel %vm1261_vm3, %v1260_v5, %v3472_v42 }
 0x1f3   : > { %v1157_v46 = vpop.permute.xlu1 %1156  ;;  %v1133_v4 = vpop.permute.xlu0 %1132 }
 0x1f4   : > { %v1383_v30 = vsel %vm1361_vm7, %v1358_v49, %v1157_v46  ;;  %v1371_v37 = vsel %vm1361_vm7, %v1346_v19, %v1133_v4 }
 0x1f5   : > { %2092 = vmatmul.mubr.msk.f32.gmra.mrb[8].mxu0 %vm1402_vm8, %v1371_v37  ;;  %2110 = vmatmul.mubr.msk.f32.gmra.mrb[8].mxu1 %vm1402_vm8, %v1383_v30 }
 0x1f7   : > { %v873_v0 = vpop.permute.xlu1 %872  ;;  %v849_v63 = vpop.permute.xlu0 %848 }
 0x1f8   : > { %v1310_v55 = vsel %vm1286_vm4, %v1285_v1, %v873_v0  ;;  %v1298_v17 = vsel %vm1286_vm4, %v1273_v9, %v849_v63 }
 0x1fb   : > { %v967_v47 = vpop.permute.xlu1 %966  ;;  %v943_v29 = vpop.permute.xlu0 %942 }
 0x1fc   : > { %v1334_v32 = vsel %vm1311_vm5, %v1309_v31, %v967_v47  ;;  %v1322_v20 = vsel %vm1311_vm5, %v1297_v60, %v943_v29 }
 0x1fd   : > { %v2081_v8 = vpop.f32.mrb[0].mxu0  ;;  %v2099_v21 = vpop.f32.mrb[0].mxu1 }
 0x1fe   : > { %v1547_v28 = vadd.f32 %v2081_v8, %v3496_v2  ;;  %v1607_v50 = vadd.f32 %v2099_v21, %v3496_v2  ;;  %v1541_v54 = vpop.f32.mrb[1].mxu0  ;;  %v1601_v13 = vpop.f32.mrb[1].mxu1 }
 0x1ff   : > { %v1542_v35 = vadd.f32 %v3496_v2, %v1541_v54  ;;  %v1602_v57 = vadd.f32 %v3496_v2, %v1601_v13  ;;  %v969_v58 = vpop.permute.xlu1 %968  ;;  %v945_v43 = vpop.permute.xlu0 %944 }
 0x200   : > { %1661 = vst [vmem:[%s3502_s27 + $0x8] sm:$0xff] %v1547_v28  ;;  %1673 = vst [vmem:[%s3502_s27 + $0x68] sm:$0xff] %v1607_v50  ;;  %v1335_v26 = vsel %vm1311_vm5, %v1310_v55, %v969_v58  ;;  %v1323_v36 = vsel %vm1311_vm5, %v1298_v17, %v945_v43 }
 0x201   : > { %1660 = vst [vmem:[%s3502_s27] sm:$0xff] %v1542_v35  ;;  %1672 = vst [vmem:[%s3502_s27 + $0x60] sm:$0xff] %v1602_v57 }
 0x203   : > { %v1063_v33 = vpop.permute.xlu1 %1062  ;;  %v1039_v48 = vpop.permute.xlu0 %1038 }
 0x204   : > { %v1359_v34 = vsel %vm1336_vm6, %v1334_v32, %v1063_v33  ;;  %v1347_v59 = vsel %vm1336_vm6, %v1322_v20, %v1039_v48 }
 0x207   : > { %v1065_v52 = vpop.permute.xlu1 %1064  ;;  %v1041_v7 = vpop.permute.xlu0 %1040 }
 0x208   : > { %v1360_v42 = vsel %vm1336_vm6, %v1335_v26, %v1065_v52  ;;  %v1348_v41 = vsel %vm1336_vm6, %v1323_v36, %v1041_v7 }
 0x20b   : > { %v1159_v24 = vpop.permute.xlu1 %1158  ;;  %v1135_v23 = vpop.permute.xlu0 %1134 }
 0x20c   : > { %v1384_v16 = vsel %vm1361_vm7, %v1359_v34, %v1159_v24  ;;  %v1372_v12 = vsel %vm1361_vm7, %v1347_v59, %v1135_v23 }
 0x20d   : > { %2094 = vmatprep.mubr.msk.f32.mxu0 %vm1402_vm8, %v1372_v12  ;;  %2112 = vmatprep.mubr.msk.f32.mxu1 %vm1402_vm8, %v1384_v16 }
 0x20f   : > { %v1161_v39 = vpop.permute.xlu1 %1160  ;;  %v1137_v45 = vpop.permute.xlu0 %1136 }
 0x210   : > { %v1385_v3 = vsel %vm1361_vm7, %v1360_v42, %v1161_v39  ;;  %v1373_v49 = vsel %vm1361_vm7, %v1348_v41, %v1137_v45 }
 0x211   : > { %2095 = vmatmul.mubr.msk.f32.gmra.mrb[10].mxu0 %vm1402_vm8, %v1373_v49  ;;  %2113 = vmatmul.mubr.msk.f32.gmra.mrb[10].mxu1 %vm1402_vm8, %v1385_v3 }
 0x22d   : > { %v2084_v19 = vpop.f32.mrb[2].mxu0  ;;  %v2102_v46 = vpop.f32.mrb[2].mxu1 }
 0x22e   : > { %v1557_v4 = vadd.f32 %v2084_v19, %v3496_v2  ;;  %v1617_v30 = vadd.f32 %v2102_v46, %v3496_v2  ;;  %v1551_v37 = vpop.f32.mrb[3].mxu0  ;;  %v1611_v0 = vpop.f32.mrb[3].mxu1 }
 0x22f   : > { %v1552_v63 = vadd.f32 %v3496_v2, %v1551_v37  ;;  %v1612_v47 = vadd.f32 %v3496_v2, %v1611_v0 }
 0x230   : > { %1663 = vst [vmem:[%s3502_s27 + $0x18] sm:$0xff] %v1557_v4  ;;  %1675 = vst [vmem:[%s3502_s27 + $0x78] sm:$0xff] %v1617_v30 }
 0x231   : > { %1662 = vst [vmem:[%s3502_s27 + $0x10] sm:$0xff] %v1552_v63  ;;  %1674 = vst [vmem:[%s3502_s27 + $0x70] sm:$0xff] %v1612_v47 }
 0x261   : > { %v2087_v29 = vpop.f32.mrb[4].mxu0  ;;  %v2105_v8 = vpop.f32.mrb[4].mxu1 }
 0x262   : > { %v1567_v21 = vadd.f32 %v2087_v29, %v3496_v2  ;;  %v1627_v28 = vadd.f32 %v2105_v8, %v3496_v2  ;;  %v1561_v50 = vpop.f32.mrb[5].mxu0  ;;  %v1621_v54 = vpop.f32.mrb[5].mxu1 }
 0x263   : > { %v1562_v13 = vadd.f32 %v3496_v2, %v1561_v50  ;;  %v1622_v35 = vadd.f32 %v3496_v2, %v1621_v54 }
 0x264   : > { %1665 = vst [vmem:[%s3502_s27 + $0x28] sm:$0xff] %v1567_v21  ;;  %1677 = vst [vmem:[%s3502_s27 + $0x88] sm:$0xff] %v1627_v28 }
 0x265   : > { %1664 = vst [vmem:[%s3502_s27 + $0x20] sm:$0xff] %v1562_v13  ;;  %1676 = vst [vmem:[%s3502_s27 + $0x80] sm:$0xff] %v1622_v35 }
 0x294   : > { %v2090_v57 = vpop.f32.mrb[6].mxu0  ;;  %v2108_v58 = vpop.f32.mrb[6].mxu1 }
 0x295   : > { %v1577_v43 = vadd.f32 %v2090_v57, %v3496_v2  ;;  %v1637_v33 = vadd.f32 %v2108_v58, %v3496_v2  ;;  %v1571_v48 = vpop.f32.mrb[7].mxu0  ;;  %v1631_v40 = vpop.f32.mrb[7].mxu1 }
 0x296   : > { %v1572_v18 = vadd.f32 %v3496_v2, %v1571_v48  ;;  %v1632_v51 = vadd.f32 %v3496_v2, %v1631_v40 }
 0x297   : > { %1667 = vst [vmem:[%s3502_s27 + $0x38] sm:$0xff] %v1577_v43  ;;  %1679 = vst [vmem:[%s3502_s27 + $0x98] sm:$0xff] %v1637_v33 }
 0x298   : > { %1666 = vst [vmem:[%s3502_s27 + $0x30] sm:$0xff] %v1572_v18  ;;  %1678 = vst [vmem:[%s3502_s27 + $0x90] sm:$0xff] %v1632_v51 }
 0x2c8   : > { %v2093_v62 = vpop.f32.mrb[8].mxu0  ;;  %v2111_v25 = vpop.f32.mrb[8].mxu1 }
 0x2c9   : > { %v1587_v10 = vadd.f32 %v2093_v62, %v3496_v2  ;;  %v1647_v11 = vadd.f32 %v2111_v25, %v3496_v2  ;;  %v1581_v52 = vpop.f32.mrb[9].mxu0  ;;  %v1641_v7 = vpop.f32.mrb[9].mxu1 }
 0x2ca   : > { %v1582_v27 = vadd.f32 %v3496_v2, %v1581_v52  ;;  %v1642_v15 = vadd.f32 %v3496_v2, %v1641_v7 }
 0x2cb   : > { %1669 = vst [vmem:[%s3502_s27 + $0x48] sm:$0xff] %v1587_v10  ;;  %1681 = vst [vmem:[%s3502_s27 + $0xa8] sm:$0xff] %v1647_v11 }
 0x2cc   : > { %1668 = vst [vmem:[%s3502_s27 + $0x40] sm:$0xff] %v1582_v27  ;;  %1680 = vst [vmem:[%s3502_s27 + $0xa0] sm:$0xff] %v1642_v15 }
 0x2e4   : > { %v2096_v6 = vpop.f32.mrb[10].mxu0  ;;  %v2114_v56 = vpop.f32.mrb[10].mxu1 }
 0x2e5   : > { %v1597_v22 = vadd.f32 %v2096_v6, %v3496_v2  ;;  %v1657_v38 = vadd.f32 %v2114_v56, %v3496_v2  ;;  %v1591_v31 = vpop.f32.mrb[11].mxu0  ;;  %v1651_v60 = vpop.f32.mrb[11].mxu1 }
 0x2e6   : > { %v1592_v61 = vadd.f32 %v3496_v2, %v1591_v31  ;;  %v1652_v44 = vadd.f32 %v3496_v2, %v1651_v60 }
 0x2e7   : > { %1671 = vst [vmem:[%s3502_s27 + $0x58] sm:$0xff] %v1597_v22  ;;  %1683 = vst [vmem:[%s3502_s27 + $0xb8] sm:$0xff] %v1657_v38 }
 0x2e8   : > { %1670 = vst [vmem:[%s3502_s27 + $0x50] sm:$0xff] %v1592_v61  ;;  %1682 = vst [vmem:[%s3502_s27 + $0xb0] sm:$0xff] %v1652_v44 }
 0x2e9   : > { %2237 = shalt.err (!%p2234_p6)
}
 0x2ea   : > { %s2238_s10 = scalar_lea.hbm %s3604_s7, 3072  ;;  %s2242_s4 = scalar_lea.hbm %s3668_s3, 12288 }
 0x2eb   : > { %p2239_p7 = scmp.ne.s32.totalorder %s3604_s7, %s2238_s10  ;;  %p2243_p11 = scmp.lt.u32.totalorder %s3604_s7, %s3668_s3 }
 0x2ec   : > { %p2244_p12 = scmp.lt.u32.totalorder %s2242_s4, %s2238_s10  ;;  %p2246_p0 = scmp.lt.u32.totalorder %s2238_s10, %s3604_s7 }
 0x2ed   : > { %p2240_p9 = pnand %p2239_p7, %p2401_p3 }
 0x2ee   : > { %p2245_p13 = por %p2244_p12, %p2243_p11 }
 0x2ef   : > { %p2241_p10 = pneg %p2240_p9 }
 0x2f0   : > { %p2247_p1 = por %p2246_p0, %p2245_p13 }
 0x2f2   : > { %p2248_p2 = pnand %p2247_p1, %p2241_p10 }
 0x2f4   : > { %2251 = shalt.err (!%p2248_p2)
}
 0x2f5   : > { %s2329_s15 = smov 128  }
 0x2f6   : > { %2144 = dma.vmem_to_hbm [thread:$0]  (%p2401_p3), %s3597_s5, 3072, %s3604_s7, %s3612_s8, %s2329_s15, %s2329_s15, %s2320_s11  }
 0x2f7 PF: > { %p2150_p4 = scmp.ge.s32.totalorder %s2318_s19, 2  ;;  %s1715_s16 = sand.u32 1, %s2290_s12  }
 0x2f8   : > { %s1716_s9 = scalar_lea.sflag [#allocation3], %s1715_s16 }
 0x2f9   : > { %p2147_p5 = pnand %p2150_p4, %p2410_p8 }
 0x2fb   : > { %2285 = dma.done.wait (!%p2147_p5), %s1716_s9, 3072  }
 0x2fc   : > { %2287 = vsyncadd (!%p2147_p5), %s1716_s9, 4294964224  ;;  %s16_s19 = sadd.s32 1, %s2318_s19   ;;  %s3734_s12 = smov %s2294_s13 }
 0x2fd   : > { %p13_p6 = scmp.ge.s32.totalorder %s16_s19, 6   ;;  %s3735_s13 = smov %s2298_s14 }
 0x2fe   : > { %s3736_s14 = smov %s2419_s30  ;;  %s3737_s15 = smov %s2310_s17 }
 0x2ff   : > { %s3738_s16 = smov %s2314_s18  ;;  %s3739_s17 = smov %s3742_s22 }
 0x300   : > { %s3740_s18 = smov %s3746_s23  ;;  %15 = sbr.rel (!%p13_p6) target bundleno = 5 (0x5), region = 76 }
 0x307   :  { %1721 = vsyncpa [#allocation3], 1 }
 0x308   :  { %1723 = vsyncpa [#allocation3 + $0x1], 1 }

</bundles_post_ra>
